<compile_context>
chip_gen: v7x
topology: tpu7x:2x2x1
jax: 0.10.0
libtpu: 0.0.40
codegen_flags: <defaults>
</compile_context>

<pallas_src>
import math
from functools import partial

import jax
import jax.numpy as jnp
from jax.experimental import pallas as pl
from jax.experimental.pallas import tpu as pltpu


# MXU operand dtype.  bf16 weights live in HBM in bf16 (halved DMA traffic);
# activations are kept f32 and cast once per matmul.  Set to jnp.float32 for
# bit-tighter validation runs (weights then stay f32 end-to-end).
MXU_DTYPE = jnp.bfloat16


# ----------------------------- in-kernel helpers -----------------------------

def _layernorm(x, gamma, beta, eps=1e-5):
    # Single-pass LayerNorm (E[x], E[x^2]).  gamma/beta already broadcast or
    # broadcastable against x.
    mu = jnp.mean(x, axis=-1, keepdims=True)
    ms = jnp.mean(x * x, axis=-1, keepdims=True)
    var = jnp.maximum(ms - mu * mu, 0.0)
    return (x - mu) * jax.lax.rsqrt(var + eps) * gamma + beta


def _gelu(x):
    # exact (erf-based) GELU, matching torch.nn.GELU() default
    return 0.5 * x * (1.0 + jax.lax.erf(x * (1.0 / math.sqrt(2.0))))


def _mxu_dot(a, b):
    # (M,K)@(K,N) on the MXU; f32 accumulation.  Only operands that are not
    # already MXU_DTYPE (i.e. the activation side) get cast — weights arrive
    # from HBM already in MXU_DTYPE.
    if a.dtype != MXU_DTYPE:
        a = a.astype(MXU_DTYPE)
    if b.dtype != MXU_DTYPE:
        b = b.astype(MXU_DTYPE)
    return jax.lax.dot_general(
        a, b, dimension_numbers=(((1,), (0,)), ((), ())),
        preferred_element_type=jnp.float32)


# --------------------------------- fused kernel -------------------------------

def _mixer_fused_kernel(patch_ref, proj_w_ref, proj_b_ref,
                        ln_w_ref, ln_b_ref,
                        tw1_ref, tb1_ref, tw2_ref, tb2_ref,
                        cw1_ref, cb1_ref, cw2_ref, cb2_ref,
                        hln_w_ref, hln_b_ref, hw_ref, hb_ref,
                        out_ref, tok_sc, *, tile_b, n_patches):
    blk = pl.program_id(1)
    N = n_patches
    rows, D = tok_sc.shape

    # First block step: patch -> hidden projection into the resident scratch
    # (tile_b*N rows folded into the matmul M dimension).
    @pl.when(blk == 0)
    def _():
        tok_sc[...] = _mxu_dot(patch_ref[...], proj_w_ref[...]) + proj_b_ref[...]

    x = tok_sc[...]                         # (rows, D) f32, VMEM resident

    # Hoist the (1,D)->(rows,D) broadcasts once per block step; reused by both
    # LayerNorms of this block (the reference shares one nn.LayerNorm instance).
    gamma = jnp.broadcast_to(ln_w_ref[...], (rows, D))
    beta = jnp.broadcast_to(ln_b_ref[...], (rows, D))

    # ---- token mixing: contract the patch axis, no transposes ---------------
    y = _layernorm(x, gamma, beta)
    tw1, tb1 = tw1_ref[...], tb1_ref[...]   # (T, N) bf16, (T, 1) f32  (out, in)
    tw2, tb2 = tw2_ref[...], tb2_ref[...]   # (N, T) bf16, (N, 1) f32
    for b in range(tile_b):                 # static unroll; tile_b is small
        lo = b * N
        y_b = y[lo:lo + N, :]                                   # (N, D)
        h = _gelu(_mxu_dot(tw1, y_b) + tb1)                     # (T, D)
        # Residual written straight into the resident scratch (no concatenate,
        # no extra (rows, D) VMEM copy).
        tok_sc[lo:lo + N, :] = x[lo:lo + N, :] + _mxu_dot(tw2, h) + tb2
    x = tok_sc[...]                         # reload tokens after token mixing

    # ---- channel mixing: batch*patches rows folded into the M dimension -----
    y = _layernorm(x, gamma, beta)
    h = _gelu(_mxu_dot(y, cw1_ref[...]) + cb1_ref[...])         # (rows, C)
    tok_sc[...] = x + _mxu_dot(h, cw2_ref[...]) + cb2_ref[...]  # (rows, D)

    # Last block step: classification head (lane-dense padded n_classes).
    @pl.when(blk == pl.num_programs(1) - 1)
    def _():
        t = tok_sc[...]
        yh = _layernorm(t, hln_w_ref[...], hln_b_ref[...])
        if tile_b == 1:
            m = jnp.mean(yh, axis=0, keepdims=True)                      # (1, D)
        elif N % 8 == 0:
            m = jnp.mean(yh.reshape(tile_b, N, D), axis=1)               # (tile_b, D)
        else:
            # Reshape would cross (8,128) tiles -> relayout copy; mean per b.
            m = jnp.concatenate(
                [jnp.mean(yh[b * N:(b + 1) * N, :], axis=0, keepdims=True)
                 for b in range(tile_b)], axis=0)
        out_ref[...] = _mxu_dot(m, hw_ref[...]) + hb_ref[...]


# ------------------------------ wrapper / glue ---------------------------------

def patchify(x, patch_size):
    """'b c (v p1) (h p2) -> b (v h) (p1 p2 c)'  (plain-JAX glue outside kernel).

    Negligible at small sizes; for ImageNet-scale inputs fuse this reorder into
    the projection step (per-tile Element specs on the raw image) to avoid an
    extra HBM round trip of the activation tensor.
    """
    B, C, H, W = x.shape
    p = patch_size
    v, h = H // p, W // p
    x = x.reshape(B, C, v, p, h, p)
    x = jnp.transpose(x, (0, 2, 4, 3, 5, 1))      # b v h p1 p2 c
    return x.reshape(B, v * h, p * p * C)


def mlp_mixer_forward(x, params, patch_size, *, batch_tile=None):
    tokens = patchify(x, patch_size)                       # (B, N, P)
    B, N, P = tokens.shape

    if batch_tile is None:
        # Default: one batch tile.  Per-block weights are streamed from HBM
        # exactly once per forward and the matmul M dimension is B*N (as large
        # as possible).  On v7x (2 TCs) pass an even number of tiles >= 2 when
        # each tile still gives M >= 128.
        batch_tile = B
    assert B % batch_tile == 0, (B, batch_tile)
    num_tiles = B // batch_tile
    tokens2d = tokens.reshape(B * N, P)                    # fold batch into rows

    D = params["proj_w"].shape[1]
    n_blocks, T, _ = params["tok_w1"].shape                # tok_w1: (blocks, T, N)
    C = params["ch_w1"].shape[2]
    NC = params["head_w"].shape[1]

    # Matmul weights stream from HBM in MXU_DTYPE (bf16): half the DMA traffic,
    # no per-grid-step f32->bf16 cast of the weight operand.  Biases and
    # LayerNorm params stay f32 (VPU math stays f32).
    wcast = lambda w: w.astype(MXU_DTYPE)
    proj_w = wcast(params["proj_w"])
    tok_w1, tok_w2 = wcast(params["tok_w1"]), wcast(params["tok_w2"])
    ch_w1, ch_w2 = wcast(params["ch_w1"]), wcast(params["ch_w2"])

    # Lane-dense head output: pad n_classes up to a multiple of 128 lanes.
    NC_pad = max(128, ((NC + 127) // 128) * 128)
    head_w = wcast(
        jnp.zeros((D, NC_pad), jnp.float32).at[:, :NC].set(params["head_w"]))
    head_b = jnp.zeros((1, NC_pad), jnp.float32).at[:, :NC].set(
        params["head_b"].reshape(1, NC))

    rows = batch_tile * N

    const = lambda shape: pl.BlockSpec(shape, lambda i, blk: (0, 0))
    per_tile = lambda shape: pl.BlockSpec(shape, lambda i, blk: (i, 0))
    per_block = lambda r, c: pl.BlockSpec((pl.Squeezed(), r, c),
                                          lambda i, blk: (blk, 0, 0))

    kernel = partial(_mixer_fused_kernel, tile_b=batch_tile, n_patches=N)

    out = pl.pallas_call(
        kernel,
        out_shape=jax.ShapeDtypeStruct((B, NC_pad), jnp.float32),
        grid=(num_tiles, n_blocks),
        in_specs=[
            per_tile((rows, P)),                     # patchified tokens (per tile)
            const((P, D)), const((1, D)),            # hidden projection (bf16 W)
            per_block(1, D), per_block(1, D),        # block LayerNorm gamma/beta
            per_block(T, N), per_block(T, 1),        # token MLP linear_1 (out,in)+b
            per_block(N, T), per_block(N, 1),        # token MLP linear_2 (out,in)+b
            per_block(D, C), per_block(1, C),        # channel MLP linear_1 (in,out)+b
            per_block(C, D), per_block(1, D),        # channel MLP linear_2 (in,out)+b
            const((1, D)), const((1, D)),            # head LayerNorm
            const((D, NC_pad)), const((1, NC_pad)),  # head linear (bf16 W, padded)
        ],
        out_specs=per_tile((batch_tile, NC_pad)),
        scratch_shapes=[pltpu.VMEM((rows, D), jnp.float32)],   # resident tokens
        compiler_params=pltpu.CompilerParams(
            # batch tiles parallel (2 TCs on v7x); blocks axis is a sequential
            # carry over the resident token scratch.
            dimension_semantics=("parallel", "arbitrary"),
            vmem_limit_bytes=32 * 1024 * 1024,
        ),
    )(tokens2d, proj_w, params["proj_b"],
      params["ln_w"], params["ln_b"],
      tok_w1, params["tok_b1"], tok_w2, params["tok_b2"],
      ch_w1, params["ch_b1"], ch_w2, params["ch_b2"],
      params["head_ln_w"], params["head_ln_b"], head_w, head_b)

    return out[:, :NC]


# --------------------------- pure-JAX reference (f32) --------------------------

def mlp_mixer_reference(x, params, patch_size):
    tokens = patchify(x, patch_size)                       # (B, N, P)
    h = jnp.einsum('bnp,pd->bnd', tokens, params["proj_w"]) + params["proj_b"]

    def ln(z, g, b, eps=1e-5):
        mu = jnp.mean(z, axis=-1, keepdims=True)
        var = jnp.mean((z - mu) ** 2, axis=-1, keepdims=True)
        return (z - mu) * jax.lax.rsqrt(var + eps) * g + b

    gelu = lambda z: 0.5 * z * (1.0 + jax.lax.erf(z / math.sqrt(2.0)))

    n_blocks = params["tok_w1"].shape[0]
    for i in range(n_blocks):
        g, b = params["ln_w"][i], params["ln_b"][i]
        # token mixing (operates on transposed (B, D, N) view, as in the ref)
        y = jnp.swapaxes(ln(h, g, b), 1, 2)                            # (B, D, N)
        t = gelu(jnp.einsum('bdn,tn->bdt', y, params["tok_w1"][i])
                 + params["tok_b1"][i][:, 0])
        t = (jnp.einsum('bdt,nt->bdn', t, params["tok_w2"][i])
             + params["tok_b2"][i][:, 0])
        h = h + jnp.swapaxes(t, 1, 2)
        # channel mixing (same shared LayerNorm instance)
        y = ln(h, g, b)
        c = gelu(jnp.einsum('bnd,dc->bnc', y, params["ch_w1"][i])
                 + params["ch_b1"][i])
        h = h + jnp.einsum('bnc,cd->bnd', c, params["ch_w2"][i]) + params["ch_b2"][i]

    y = ln(h, params["head_ln_w"], params["head_ln_b"])
    m = jnp.mean(y, axis=1)                                            # (B, D)
    return m @ params["head_w"] + params["head_b"].reshape(-1)


# ------------------------------ parameter setup --------------------------------

def init_params(key, *, channels, patch_size, hidden_dim, n_patches,
                token_mlp_dim, channel_mlp_dim, n_classes, n_blocks):
    def lin(key, fan_in, fan_out, shape):
        # nn.Linear-style init: U(-1/sqrt(fan_in), 1/sqrt(fan_in))
        kw, kb = jax.random.split(key)
        bound = 1.0 / math.sqrt(fan_in)
        w = jax.random.uniform(kw, shape, jnp.float32, -bound, bound)
        b = jax.random.uniform(kb, (fan_out,), jnp.float32, -bound, bound)
        return w, b

    patch_dim = patch_size * patch_size * channels
    keys = jax.random.split(key, 2 + n_blocks)
    proj_w, proj_b = lin(keys[0], patch_dim, hidden_dim, (patch_dim, hidden_dim))

    tw1, tb1, tw2, tb2 = [], [], [], []
    cw1, cb1, cw2, cb2 = [], [], [], []
    for i in range(n_blocks):
        k0, k1, k2, k3 = jax.random.split(keys[2 + i], 4)
        # Token MLP weights in (out_features, in_features) layout -> in-kernel
        # matmuls contract the patch axis with NO transpose.
        w, b = lin(k0, n_patches, token_mlp_dim, (token_mlp_dim, n_patches))
        tw1.append(w); tb1.append(b.reshape(token_mlp_dim, 1))
        w, b = lin(k1, token_mlp_dim, n_patches, (n_patches, token_mlp_dim))
        tw2.append(w); tb2.append(b.reshape(n_patches, 1))
        # Channel MLP weights in (in, out) layout: activations are (rows, D).
        w, b = lin(k2, hidden_dim, channel_mlp_dim, (hidden_dim, channel_mlp_dim))
        cw1.append(w); cb1.append(b.reshape(1, channel_mlp_dim))
        w, b = lin(k3, channel_mlp_dim, hidden_dim, (channel_mlp_dim, hidden_dim))
        cw2.append(w); cb2.append(b.reshape(1, hidden_dim))

    head_w, head_b = lin(keys[1], hidden_dim, n_classes, (hidden_dim, n_classes))

    stack = lambda xs: jnp.stack(xs, axis=0)
    return dict(
        proj_w=proj_w, proj_b=proj_b.reshape(1, hidden_dim),
        # One LayerNorm per block, reused for BOTH norms (matches the reference).
        ln_w=jnp.ones((n_blocks, 1, hidden_dim), jnp.float32),
        ln_b=jnp.zeros((n_blocks, 1, hidden_dim), jnp.float32),
        tok_w1=stack(tw1), tok_b1=stack(tb1),
        tok_w2=stack(tw2), tok_b2=stack(tb2),
        ch_w1=stack(cw1), ch_b1=stack(cb1),
        ch_w2=stack(cw2), ch_b2=stack(cb2),
        head_ln_w=jnp.ones((1, hidden_dim), jnp.float32),
        head_ln_b=jnp.zeros((1, hidden_dim), jnp.float32),
        head_w=head_w, head_b=head_b,
    )


# ----------------------------------- main --------------------------------------

if __name__ == "__main__":
    B = 2
    channels, img_h, img_w = 3, 16, 16
    patch_size = 4
    hidden_dim = 32
    n_classes = 10
    n_blocks = 2
    n_patches = (img_h // patch_size) * (img_w // patch_size)   # 16
    token_mlp_dim = n_patches        # defaults (projection_dim=None -> dim)
    channel_mlp_dim = hidden_dim

    key = jax.random.PRNGKey(0)
    k_params, k_x = jax.random.split(key)
    params = init_params(
        k_params, channels=channels, patch_size=patch_size, hidden_dim=hidden_dim,
        n_patches=n_patches, token_mlp_dim=token_mlp_dim,
        channel_mlp_dim=channel_mlp_dim, n_classes=n_classes, n_blocks=n_blocks)

    x = jax.random.normal(k_x, (B, channels, img_h, img_w), jnp.float32)

    # batch_tile=None -> whole batch in one tile (weights stream once, max M).
    fwd = jax.jit(partial(mlp_mixer_forward, patch_size=patch_size))
    out = fwd(x, params)
    jax.block_until_ready(out)
    assert out.shape == (B, n_classes), out.shape

    # Loose-tolerance check vs a pure-f32 JAX reference (kernel uses bf16 MXU
    # operands, so expect ~1e-2-level deviations).
    ref = mlp_mixer_reference(x, params, patch_size)
    assert jnp.all(jnp.isfinite(out))
    assert jnp.allclose(out, ref, atol=5e-2, rtol=5e-2), (
        float(jnp.max(jnp.abs(out - ref))))

    print("KERNEL_OK")
</pallas_src>

<mosaic_0001>
module attributes {stable_mosaic.version = 11 : i64} {
  func.func @_mixer_fused_kernel(%arg0: i32, %arg1: i32, %arg2: memref<32x48xf32, #tpu.memory_space<vmem>>, %arg3: memref<48x32xbf16, #tpu.memory_space<vmem>>, %arg4: memref<1x32xf32, #tpu.memory_space<vmem>>, %arg5: memref<1x1x32xf32, #tpu.memory_space<vmem>>, %arg6: memref<1x1x32xf32, #tpu.memory_space<vmem>>, %arg7: memref<1x16x16xbf16, #tpu.memory_space<vmem>>, %arg8: memref<1x16x1xf32, #tpu.memory_space<vmem>>, %arg9: memref<1x16x16xbf16, #tpu.memory_space<vmem>>, %arg10: memref<1x16x1xf32, #tpu.memory_space<vmem>>, %arg11: memref<1x32x32xbf16, #tpu.memory_space<vmem>>, %arg12: memref<1x1x32xf32, #tpu.memory_space<vmem>>, %arg13: memref<1x32x32xbf16, #tpu.memory_space<vmem>>, %arg14: memref<1x1x32xf32, #tpu.memory_space<vmem>>, %arg15: memref<1x32xf32, #tpu.memory_space<vmem>>, %arg16: memref<1x32xf32, #tpu.memory_space<vmem>>, %arg17: memref<32x128xbf16, #tpu.memory_space<vmem>>, %arg18: memref<1x128xf32, #tpu.memory_space<vmem>>, %arg19: memref<2x128xf32, #tpu.memory_space<vmem>>, %arg20: memref<32x32xf32, #tpu.memory_space<vmem>>) attributes {dimension_semantics = [#tpu.dimension_semantics<parallel>, #tpu.dimension_semantics<arbitrary>], iteration_bounds = array<i64: 1, 2>, scalar_prefetch = 0 : i64, scratch_operands = 1 : i64, tpu.core_type = #tpu.core_type<tc>, window_params = [{transform_indices = @transform_0, window_bounds = array<i64: 32, 48>}, {pipeline_mode = #tpu.pipeline_mode<synchronous>, transform_indices = @transform_1, window_bounds = array<i64: 48, 32>}, {pipeline_mode = #tpu.pipeline_mode<synchronous>, transform_indices = @transform_2, window_bounds = array<i64: 1, 32>}, {transform_indices = @transform_3, window_bounds = array<i64: 1, 1, 32>}, {transform_indices = @transform_4, window_bounds = array<i64: 1, 1, 32>}, {transform_indices = @transform_5, window_bounds = array<i64: 1, 16, 16>}, {transform_indices = @transform_6, window_bounds = array<i64: 1, 16, 1>}, {transform_indices = @transform_7, window_bounds = array<i64: 1, 16, 16>}, {transform_indices = @transform_8, window_bounds = array<i64: 1, 16, 1>}, {transform_indices = @transform_9, window_bounds = array<i64: 1, 32, 32>}, {transform_indices = @transform_10, window_bounds = array<i64: 1, 1, 32>}, {transform_indices = @transform_11, window_bounds = array<i64: 1, 32, 32>}, {transform_indices = @transform_12, window_bounds = array<i64: 1, 1, 32>}, {pipeline_mode = #tpu.pipeline_mode<synchronous>, transform_indices = @transform_13, window_bounds = array<i64: 1, 32>}, {pipeline_mode = #tpu.pipeline_mode<synchronous>, transform_indices = @transform_14, window_bounds = array<i64: 1, 32>}, {pipeline_mode = #tpu.pipeline_mode<synchronous>, transform_indices = @transform_15, window_bounds = array<i64: 32, 128>}, {pipeline_mode = #tpu.pipeline_mode<synchronous>, transform_indices = @transform_16, window_bounds = array<i64: 1, 128>}, {transform_indices = @transform_17, window_bounds = array<i64: 2, 128>}]} {
    %c0_i32 = arith.constant 0 : i32
    %0 = arith.cmpi eq, %arg1, %c0_i32 : i32
    %1 = arith.extui %0 : i1 to i32
    %c0_i32_0 = arith.constant 0 : i32
    %2 = arith.cmpi ne, %1, %c0_i32_0 : i32
    scf.if %2 {
      %c0_66 = arith.constant 0 : index
      %c0_67 = arith.constant 0 : index
      %134 = vector.load %arg2[%c0_66, %c0_67] : memref<32x48xf32, #tpu.memory_space<vmem>>, vector<32x48xf32>
      %c0_68 = arith.constant 0 : index
      %c0_69 = arith.constant 0 : index
      %135 = vector.load %arg3[%c0_68, %c0_69] : memref<48x32xbf16, #tpu.memory_space<vmem>>, vector<48x32xbf16>
      %136 = arith.truncf %134 : vector<32x48xf32> to vector<32x48xbf16>
      %cst_70 = arith.constant dense<0.000000e+00> : vector<32x32xf32>
      %137 = tpu.matmul %136, %135, %cst_70 {dimension_numbers = #tpu.dot_dimension_numbers<[1], [0], [0], [1], [0, 0, 1, 1], [], []>} : vector<32x48xbf16>, vector<48x32xbf16>, vector<32x32xf32> -> vector<32x32xf32>
      %c0_71 = arith.constant 0 : index
      %c0_72 = arith.constant 0 : index
      %138 = vector.load %arg4[%c0_71, %c0_72] : memref<1x32xf32, #tpu.memory_space<vmem>>, vector<1x32xf32>
      %139 = vector.broadcast %138 : vector<1x32xf32> to vector<32x32xf32>
      %140 = arith.addf %137, %139 : vector<32x32xf32>
      %c0_73 = arith.constant 0 : index
      %c0_74 = arith.constant 0 : index
      %141 = vector.load %arg20[%c0_73, %c0_74] : memref<32x32xf32, #tpu.memory_space<vmem>>, vector<32x32xf32>
      tpu.vector_store %arg20[%c0_73, %c0_74], %140 {strides = array<i32>} : memref<32x32xf32, #tpu.memory_space<vmem>>, vector<32x32xf32>,
    } else {
    }
    %c0 = arith.constant 0 : index
    %c0_1 = arith.constant 0 : index
    %3 = vector.load %arg20[%c0, %c0_1] : memref<32x32xf32, #tpu.memory_space<vmem>>, vector<32x32xf32>
    %c0_2 = arith.constant 0 : index
    %c0_3 = arith.constant 0 : index
    %c0_4 = arith.constant 0 : index
    %4 = vector.load %arg5[%c0_2, %c0_3, %c0_4] : memref<1x1x32xf32, #tpu.memory_space<vmem>>, vector<1x1x32xf32>
    %5 = vector.shape_cast %4 : vector<1x1x32xf32> to vector<1x32xf32>
    %6 = vector.shape_cast %5 : vector<1x32xf32> to vector<1x32xf32>
    %7 = vector.broadcast %6 : vector<1x32xf32> to vector<32x32xf32>
    %c0_5 = arith.constant 0 : index
    %c0_6 = arith.constant 0 : index
    %c0_7 = arith.constant 0 : index
    %8 = vector.load %arg6[%c0_5, %c0_6, %c0_7] : memref<1x1x32xf32, #tpu.memory_space<vmem>>, vector<1x1x32xf32>
    %9 = vector.shape_cast %8 : vector<1x1x32xf32> to vector<1x32xf32>
    %10 = vector.shape_cast %9 : vector<1x32xf32> to vector<1x32xf32>
    %11 = vector.broadcast %10 : vector<1x32xf32> to vector<32x32xf32>
    %cst = arith.constant dense<0.000000e+00> : vector<32xf32>
    %12 = vector.multi_reduction <add>, %3, %cst [1] : vector<32x32xf32> to vector<32xf32>
    %13 = vector.shape_cast %12 : vector<32xf32> to vector<32x1xf32>
    %cst_8 = arith.constant 3.200000e+01 : f32
    %14 = vector.broadcast %cst_8 : f32 to vector<32x1xf32>
    %15 = arith.divf %13, %14 : vector<32x1xf32>
    %16 = arith.mulf %3, %3 : vector<32x32xf32>
    %cst_9 = arith.constant dense<0.000000e+00> : vector<32xf32>
    %17 = vector.multi_reduction <add>, %16, %cst_9 [1] : vector<32x32xf32> to vector<32xf32>
    %18 = vector.shape_cast %17 : vector<32xf32> to vector<32x1xf32>
    %cst_10 = arith.constant 3.200000e+01 : f32
    %19 = vector.broadcast %cst_10 : f32 to vector<32x1xf32>
    %20 = arith.divf %18, %19 : vector<32x1xf32>
    %21 = arith.mulf %15, %15 : vector<32x1xf32>
    %22 = arith.subf %20, %21 : vector<32x1xf32>
    %cst_11 = arith.constant 0.000000e+00 : f32
    %23 = vector.broadcast %cst_11 : f32 to vector<32x1xf32>
    %24 = arith.maximumf %22, %23 : vector<32x1xf32>
    %25 = vector.broadcast %15 : vector<32x1xf32> to vector<32x32xf32>
    %26 = arith.subf %3, %25 : vector<32x32xf32>
    %cst_12 = arith.constant 9.99999974E-6 : f32
    %27 = vector.broadcast %cst_12 : f32 to vector<32x1xf32>
    %28 = arith.addf %24, %27 : vector<32x1xf32>
    %29 = math.rsqrt %28 : vector<32x1xf32>
    %30 = vector.broadcast %29 : vector<32x1xf32> to vector<32x32xf32>
    %31 = arith.mulf %26, %30 : vector<32x32xf32>
    %32 = arith.mulf %31, %7 : vector<32x32xf32>
    %33 = arith.addf %32, %11 : vector<32x32xf32>
    %c0_13 = arith.constant 0 : index
    %c0_14 = arith.constant 0 : index
    %c0_15 = arith.constant 0 : index
    %34 = vector.load %arg7[%c0_13, %c0_14, %c0_15] : memref<1x16x16xbf16, #tpu.memory_space<vmem>>, vector<1x16x16xbf16>
    %35 = vector.shape_cast %34 : vector<1x16x16xbf16> to vector<16x16xbf16>
    %c0_16 = arith.constant 0 : index
    %c0_17 = arith.constant 0 : index
    %c0_18 = arith.constant 0 : index
    %36 = vector.load %arg8[%c0_16, %c0_17, %c0_18] : memref<1x16x1xf32, #tpu.memory_space<vmem>>, vector<1x16x1xf32>
    %37 = vector.shape_cast %36 : vector<1x16x1xf32> to vector<16x1xf32>
    %c0_19 = arith.constant 0 : index
    %c0_20 = arith.constant 0 : index
    %c0_21 = arith.constant 0 : index
    %38 = vector.load %arg9[%c0_19, %c0_20, %c0_21] : memref<1x16x16xbf16, #tpu.memory_space<vmem>>, vector<1x16x16xbf16>
    %39 = vector.shape_cast %38 : vector<1x16x16xbf16> to vector<16x16xbf16>
    %c0_22 = arith.constant 0 : index
    %c0_23 = arith.constant 0 : index
    %c0_24 = arith.constant 0 : index
    %40 = vector.load %arg10[%c0_22, %c0_23, %c0_24] : memref<1x16x1xf32, #tpu.memory_space<vmem>>, vector<1x16x1xf32>
    %41 = vector.shape_cast %40 : vector<1x16x1xf32> to vector<16x1xf32>
    %42 = vector.extract_strided_slice %33 {offsets = [0, 0], sizes = [16, 32], strides = [1, 1]} : vector<32x32xf32> to vector<16x32xf32>
    %43 = arith.truncf %42 : vector<16x32xf32> to vector<16x32xbf16>
    %cst_25 = arith.constant dense<0.000000e+00> : vector<16x32xf32>
    %44 = tpu.matmul %35, %43, %cst_25 {dimension_numbers = #tpu.dot_dimension_numbers<[1], [0], [0], [1], [0, 0, 1, 1], [], []>} : vector<16x16xbf16>, vector<16x32xbf16>, vector<16x32xf32> -> vector<16x32xf32>
    %45 = vector.broadcast %37 : vector<16x1xf32> to vector<16x32xf32>
    %46 = arith.addf %44, %45 : vector<16x32xf32>
    %cst_26 = arith.constant 5.000000e-01 : f32
    %47 = vector.broadcast %cst_26 : f32 to vector<16x32xf32>
    %48 = arith.mulf %47, %46 : vector<16x32xf32>
    %cst_27 = arith.constant 0.707106769 : f32
    %49 = vector.broadcast %cst_27 : f32 to vector<16x32xf32>
    %50 = arith.mulf %46, %49 : vector<16x32xf32>
    %51 = math.erf %50 : vector<16x32xf32>
    %cst_28 = arith.constant 1.000000e+00 : f32
    %52 = vector.broadcast %cst_28 : f32 to vector<16x32xf32>
    %53 = arith.addf %52, %51 : vector<16x32xf32>
    %54 = arith.mulf %48, %53 : vector<16x32xf32>
    %55 = vector.extract_strided_slice %3 {offsets = [0, 0], sizes = [16, 32], strides = [1, 1]} : vector<32x32xf32> to vector<16x32xf32>
    %56 = arith.truncf %54 : vector<16x32xf32> to vector<16x32xbf16>
    %cst_29 = arith.constant dense<0.000000e+00> : vector<16x32xf32>
    %57 = tpu.matmul %39, %56, %cst_29 {dimension_numbers = #tpu.dot_dimension_numbers<[1], [0], [0], [1], [0, 0, 1, 1], [], []>} : vector<16x16xbf16>, vector<16x32xbf16>, vector<16x32xf32> -> vector<16x32xf32>
    %58 = arith.addf %55, %57 : vector<16x32xf32>
    %59 = vector.broadcast %41 : vector<16x1xf32> to vector<16x32xf32>
    %60 = arith.addf %58, %59 : vector<16x32xf32>
    %c0_30 = arith.constant 0 : index
    %c0_31 = arith.constant 0 : index
    %61 = vector.load %arg20[%c0_30, %c0_31] : memref<32x32xf32, #tpu.memory_space<vmem>>, vector<16x32xf32>
    tpu.vector_store %arg20[%c0_30, %c0_31], %60 {strides = array<i32>} : memref<32x32xf32, #tpu.memory_space<vmem>>, vector<16x32xf32>,
    %62 = vector.extract_strided_slice %33 {offsets = [16, 0], sizes = [16, 32], strides = [1, 1]} : vector<32x32xf32> to vector<16x32xf32>
    %63 = arith.truncf %62 : vector<16x32xf32> to vector<16x32xbf16>
    %cst_32 = arith.constant dense<0.000000e+00> : vector<16x32xf32>
    %64 = tpu.matmul %35, %63, %cst_32 {dimension_numbers = #tpu.dot_dimension_numbers<[1], [0], [0], [1], [0, 0, 1, 1], [], []>} : vector<16x16xbf16>, vector<16x32xbf16>, vector<16x32xf32> -> vector<16x32xf32>
    %65 = vector.broadcast %37 : vector<16x1xf32> to vector<16x32xf32>
    %66 = arith.addf %64, %65 : vector<16x32xf32>
    %cst_33 = arith.constant 5.000000e-01 : f32
    %67 = vector.broadcast %cst_33 : f32 to vector<16x32xf32>
    %68 = arith.mulf %67, %66 : vector<16x32xf32>
    %cst_34 = arith.constant 0.707106769 : f32
    %69 = vector.broadcast %cst_34 : f32 to vector<16x32xf32>
    %70 = arith.mulf %66, %69 : vector<16x32xf32>
    %71 = math.erf %70 : vector<16x32xf32>
    %cst_35 = arith.constant 1.000000e+00 : f32
    %72 = vector.broadcast %cst_35 : f32 to vector<16x32xf32>
    %73 = arith.addf %72, %71 : vector<16x32xf32>
    %74 = arith.mulf %68, %73 : vector<16x32xf32>
    %75 = vector.extract_strided_slice %3 {offsets = [16, 0], sizes = [16, 32], strides = [1, 1]} : vector<32x32xf32> to vector<16x32xf32>
    %76 = arith.truncf %74 : vector<16x32xf32> to vector<16x32xbf16>
    %cst_36 = arith.constant dense<0.000000e+00> : vector<16x32xf32>
    %77 = tpu.matmul %39, %76, %cst_36 {dimension_numbers = #tpu.dot_dimension_numbers<[1], [0], [0], [1], [0, 0, 1, 1], [], []>} : vector<16x16xbf16>, vector<16x32xbf16>, vector<16x32xf32> -> vector<16x32xf32>
    %78 = arith.addf %75, %77 : vector<16x32xf32>
    %79 = vector.broadcast %41 : vector<16x1xf32> to vector<16x32xf32>
    %80 = arith.addf %78, %79 : vector<16x32xf32>
    %c16 = arith.constant 16 : index
    %c0_37 = arith.constant 0 : index
    %81 = vector.load %arg20[%c16, %c0_37] : memref<32x32xf32, #tpu.memory_space<vmem>>, vector<16x32xf32>
    tpu.vector_store %arg20[%c16, %c0_37], %80 {strides = array<i32>} : memref<32x32xf32, #tpu.memory_space<vmem>>, vector<16x32xf32>,
    %c0_38 = arith.constant 0 : index
    %c0_39 = arith.constant 0 : index
    %82 = vector.load %arg20[%c0_38, %c0_39] : memref<32x32xf32, #tpu.memory_space<vmem>>, vector<32x32xf32>
    %cst_40 = arith.constant dense<0.000000e+00> : vector<32xf32>
    %83 = vector.multi_reduction <add>, %82, %cst_40 [1] : vector<32x32xf32> to vector<32xf32>
    %84 = vector.shape_cast %83 : vector<32xf32> to vector<32x1xf32>
    %cst_41 = arith.constant 3.200000e+01 : f32
    %85 = vector.broadcast %cst_41 : f32 to vector<32x1xf32>
    %86 = arith.divf %84, %85 : vector<32x1xf32>
    %87 = arith.mulf %82, %82 : vector<32x32xf32>
    %cst_42 = arith.constant dense<0.000000e+00> : vector<32xf32>
    %88 = vector.multi_reduction <add>, %87, %cst_42 [1] : vector<32x32xf32> to vector<32xf32>
    %89 = vector.shape_cast %88 : vector<32xf32> to vector<32x1xf32>
    %cst_43 = arith.constant 3.200000e+01 : f32
    %90 = vector.broadcast %cst_43 : f32 to vector<32x1xf32>
    %91 = arith.divf %89, %90 : vector<32x1xf32>
    %92 = arith.mulf %86, %86 : vector<32x1xf32>
    %93 = arith.subf %91, %92 : vector<32x1xf32>
    %cst_44 = arith.constant 0.000000e+00 : f32
    %94 = vector.broadcast %cst_44 : f32 to vector<32x1xf32>
    %95 = arith.maximumf %93, %94 : vector<32x1xf32>
    %96 = vector.broadcast %86 : vector<32x1xf32> to vector<32x32xf32>
    %97 = arith.subf %82, %96 : vector<32x32xf32>
    %cst_45 = arith.constant 9.99999974E-6 : f32
    %98 = vector.broadcast %cst_45 : f32 to vector<32x1xf32>
    %99 = arith.addf %95, %98 : vector<32x1xf32>
    %100 = math.rsqrt %99 : vector<32x1xf32>
    %101 = vector.broadcast %100 : vector<32x1xf32> to vector<32x32xf32>
    %102 = arith.mulf %97, %101 : vector<32x32xf32>
    %103 = arith.mulf %102, %7 : vector<32x32xf32>
    %104 = arith.addf %103, %11 : vector<32x32xf32>
    %c0_46 = arith.constant 0 : index
    %c0_47 = arith.constant 0 : index
    %c0_48 = arith.constant 0 : index
    %105 = vector.load %arg11[%c0_46, %c0_47, %c0_48] : memref<1x32x32xbf16, #tpu.memory_space<vmem>>, vector<1x32x32xbf16>
    %106 = vector.shape_cast %105 : vector<1x32x32xbf16> to vector<32x32xbf16>
    %107 = arith.truncf %104 : vector<32x32xf32> to vector<32x32xbf16>
    %cst_49 = arith.constant dense<0.000000e+00> : vector<32x32xf32>
    %108 = tpu.matmul %107, %106, %cst_49 {dimension_numbers = #tpu.dot_dimension_numbers<[1], [0], [0], [1], [0, 0, 1, 1], [], []>} : vector<32x32xbf16>, vector<32x32xbf16>, vector<32x32xf32> -> vector<32x32xf32>
    %c0_50 = arith.constant 0 : index
    %c0_51 = arith.constant 0 : index
    %c0_52 = arith.constant 0 : index
    %109 = vector.load %arg12[%c0_50, %c0_51, %c0_52] : memref<1x1x32xf32, #tpu.memory_space<vmem>>, vector<1x1x32xf32>
    %110 = vector.shape_cast %109 : vector<1x1x32xf32> to vector<1x32xf32>
    %111 = vector.broadcast %110 : vector<1x32xf32> to vector<32x32xf32>
    %112 = arith.addf %108, %111 : vector<32x32xf32>
    %cst_53 = arith.constant 5.000000e-01 : f32
    %113 = vector.broadcast %cst_53 : f32 to vector<32x32xf32>
    %114 = arith.mulf %113, %112 : vector<32x32xf32>
    %cst_54 = arith.constant 0.707106769 : f32
    %115 = vector.broadcast %cst_54 : f32 to vector<32x32xf32>
    %116 = arith.mulf %112, %115 : vector<32x32xf32>
    %117 = math.erf %116 : vector<32x32xf32>
    %cst_55 = arith.constant 1.000000e+00 : f32
    %118 = vector.broadcast %cst_55 : f32 to vector<32x32xf32>
    %119 = arith.addf %118, %117 : vector<32x32xf32>
    %120 = arith.mulf %114, %119 : vector<32x32xf32>
    %c0_56 = arith.constant 0 : index
    %c0_57 = arith.constant 0 : index
    %c0_58 = arith.constant 0 : index
    %121 = vector.load %arg13[%c0_56, %c0_57, %c0_58] : memref<1x32x32xbf16, #tpu.memory_space<vmem>>, vector<1x32x32xbf16>
    %122 = vector.shape_cast %121 : vector<1x32x32xbf16> to vector<32x32xbf16>
    %123 = arith.truncf %120 : vector<32x32xf32> to vector<32x32xbf16>
    %cst_59 = arith.constant dense<0.000000e+00> : vector<32x32xf32>
    %124 = tpu.matmul %123, %122, %cst_59 {dimension_numbers = #tpu.dot_dimension_numbers<[1], [0], [0], [1], [0, 0, 1, 1], [], []>} : vector<32x32xbf16>, vector<32x32xbf16>, vector<32x32xf32> -> vector<32x32xf32>
    %125 = arith.addf %82, %124 : vector<32x32xf32>
    %c0_60 = arith.constant 0 : index
    %c0_61 = arith.constant 0 : index
    %c0_62 = arith.constant 0 : index
    %126 = vector.load %arg14[%c0_60, %c0_61, %c0_62] : memref<1x1x32xf32, #tpu.memory_space<vmem>>, vector<1x1x32xf32>
    %127 = vector.shape_cast %126 : vector<1x1x32xf32> to vector<1x32xf32>
    %128 = vector.broadcast %127 : vector<1x32xf32> to vector<32x32xf32>
    %129 = arith.addf %125, %128 : vector<32x32xf32>
    %c0_63 = arith.constant 0 : index
    %c0_64 = arith.constant 0 : index
    %130 = vector.load %arg20[%c0_63, %c0_64] : memref<32x32xf32, #tpu.memory_space<vmem>>, vector<32x32xf32>
    tpu.vector_store %arg20[%c0_63, %c0_64], %129 {strides = array<i32>} : memref<32x32xf32, #tpu.memory_space<vmem>>, vector<32x32xf32>,
    %c1_i32 = arith.constant 1 : i32
    %131 = arith.cmpi eq, %arg1, %c1_i32 : i32
    %132 = arith.extui %131 : i1 to i32
    %c0_i32_65 = arith.constant 0 : i32
    %133 = arith.cmpi ne, %132, %c0_i32_65 : i32
    scf.if %133 {
      %c0_66 = arith.constant 0 : index
      %c0_67 = arith.constant 0 : index
      %134 = vector.load %arg20[%c0_66, %c0_67] : memref<32x32xf32, #tpu.memory_space<vmem>>, vector<32x32xf32>
      %c0_68 = arith.constant 0 : index
      %c0_69 = arith.constant 0 : index
      %135 = vector.load %arg15[%c0_68, %c0_69] : memref<1x32xf32, #tpu.memory_space<vmem>>, vector<1x32xf32>
      %c0_70 = arith.constant 0 : index
      %c0_71 = arith.constant 0 : index
      %136 = vector.load %arg16[%c0_70, %c0_71] : memref<1x32xf32, #tpu.memory_space<vmem>>, vector<1x32xf32>
      %cst_72 = arith.constant dense<0.000000e+00> : vector<32xf32>
      %137 = vector.multi_reduction <add>, %134, %cst_72 [1] : vector<32x32xf32> to vector<32xf32>
      %138 = vector.shape_cast %137 : vector<32xf32> to vector<32x1xf32>
      %cst_73 = arith.constant 3.200000e+01 : f32
      %139 = vector.broadcast %cst_73 : f32 to vector<32x1xf32>
      %140 = arith.divf %138, %139 : vector<32x1xf32>
      %141 = arith.mulf %134, %134 : vector<32x32xf32>
      %cst_74 = arith.constant dense<0.000000e+00> : vector<32xf32>
      %142 = vector.multi_reduction <add>, %141, %cst_74 [1] : vector<32x32xf32> to vector<32xf32>
      %143 = vector.shape_cast %142 : vector<32xf32> to vector<32x1xf32>
      %cst_75 = arith.constant 3.200000e+01 : f32
      %144 = vector.broadcast %cst_75 : f32 to vector<32x1xf32>
      %145 = arith.divf %143, %144 : vector<32x1xf32>
      %146 = arith.mulf %140, %140 : vector<32x1xf32>
      %147 = arith.subf %145, %146 : vector<32x1xf32>
      %cst_76 = arith.constant 0.000000e+00 : f32
      %148 = vector.broadcast %cst_76 : f32 to vector<32x1xf32>
      %149 = arith.maximumf %147, %148 : vector<32x1xf32>
      %150 = vector.broadcast %140 : vector<32x1xf32> to vector<32x32xf32>
      %151 = arith.subf %134, %150 : vector<32x32xf32>
      %cst_77 = arith.constant 9.99999974E-6 : f32
      %152 = vector.broadcast %cst_77 : f32 to vector<32x1xf32>
      %153 = arith.addf %149, %152 : vector<32x1xf32>
      %154 = math.rsqrt %153 : vector<32x1xf32>
      %155 = vector.broadcast %154 : vector<32x1xf32> to vector<32x32xf32>
      %156 = arith.mulf %151, %155 : vector<32x32xf32>
      %157 = vector.broadcast %135 : vector<1x32xf32> to vector<32x32xf32>
      %158 = arith.mulf %156, %157 : vector<32x32xf32>
      %159 = vector.broadcast %136 : vector<1x32xf32> to vector<32x32xf32>
      %160 = arith.addf %158, %159 : vector<32x32xf32>
      %161 = vector.shape_cast %160 : vector<32x32xf32> to vector<2x16x32xf32>
      %cst_78 = arith.constant dense<0.000000e+00> : vector<2x32xf32>
      %162 = vector.multi_reduction <add>, %161, %cst_78 [1] : vector<2x16x32xf32> to vector<2x32xf32>
      %cst_79 = arith.constant 1.600000e+01 : f32
      %163 = vector.broadcast %cst_79 : f32 to vector<2x32xf32>
      %164 = arith.divf %162, %163 : vector<2x32xf32>
      %c0_80 = arith.constant 0 : index
      %c0_81 = arith.constant 0 : index
      %165 = vector.load %arg17[%c0_80, %c0_81] : memref<32x128xbf16, #tpu.memory_space<vmem>>, vector<32x128xbf16>
      %166 = arith.truncf %164 : vector<2x32xf32> to vector<2x32xbf16>
      %cst_82 = arith.constant dense<0.000000e+00> : vector<2x128xf32>
      %167 = tpu.matmul %166, %165, %cst_82 {dimension_numbers = #tpu.dot_dimension_numbers<[1], [0], [0], [1], [0, 0, 1, 1], [], []>} : vector<2x32xbf16>, vector<32x128xbf16>, vector<2x128xf32> -> vector<2x128xf32>
      %c0_83 = arith.constant 0 : index
      %c0_84 = arith.constant 0 : index
      %168 = vector.load %arg18[%c0_83, %c0_84] : memref<1x128xf32, #tpu.memory_space<vmem>>, vector<1x128xf32>
      %169 = vector.broadcast %168 : vector<1x128xf32> to vector<2x128xf32>
      %170 = arith.addf %167, %169 : vector<2x128xf32>
      %c0_85 = arith.constant 0 : index
      %c0_86 = arith.constant 0 : index
      %171 = vector.load %arg19[%c0_85, %c0_86] : memref<2x128xf32, #tpu.memory_space<vmem>>, vector<2x128xf32>
      tpu.vector_store %arg19[%c0_85, %c0_86], %170 {strides = array<i32>} : memref<2x128xf32, #tpu.memory_space<vmem>>, vector<2x128xf32>,
    } else {
    }
    return
  }
  func.func @transform_0(%arg0: i32, %arg1: i32) -> (i32, i32) {
    %c0_i32 = arith.constant 0 : i32
    %c0_i32_0 = arith.constant 0 : i32
    return %arg0, %c0_i32 : i32, i32
  }
  func.func @transform_1(%arg0: i32, %arg1: i32) -> (i32, i32) {
    %c0_i32 = arith.constant 0 : i32
    %c0_i32_0 = arith.constant 0 : i32
    %c0_i32_1 = arith.constant 0 : i32
    return %c0_i32, %c0_i32_0 : i32, i32
  }
  func.func @transform_2(%arg0: i32, %arg1: i32) -> (i32, i32) {
    %c0_i32 = arith.constant 0 : i32
    %c0_i32_0 = arith.constant 0 : i32
    %c0_i32_1 = arith.constant 0 : i32
    return %c0_i32, %c0_i32_0 : i32, i32
  }
  func.func @transform_3(%arg0: i32, %arg1: i32) -> (i32, i32, i32) {
    %c0_i32 = arith.constant 0 : i32
    %c0_i32_0 = arith.constant 0 : i32
    %c0_i32_1 = arith.constant 0 : i32
    return %arg1, %c0_i32, %c0_i32_0 : i32, i32, i32
  }
  func.func @transform_4(%arg0: i32, %arg1: i32) -> (i32, i32, i32) {
    %c0_i32 = arith.constant 0 : i32
    %c0_i32_0 = arith.constant 0 : i32
    %c0_i32_1 = arith.constant 0 : i32
    return %arg1, %c0_i32, %c0_i32_0 : i32, i32, i32
  }
  func.func @transform_5(%arg0: i32, %arg1: i32) -> (i32, i32, i32) {
    %c0_i32 = arith.constant 0 : i32
    %c0_i32_0 = arith.constant 0 : i32
    %c0_i32_1 = arith.constant 0 : i32
    return %arg1, %c0_i32, %c0_i32_0 : i32, i32, i32
  }
  func.func @transform_6(%arg0: i32, %arg1: i32) -> (i32, i32, i32) {
    %c0_i32 = arith.constant 0 : i32
    %c0_i32_0 = arith.constant 0 : i32
    %c0_i32_1 = arith.constant 0 : i32
    return %arg1, %c0_i32, %c0_i32_0 : i32, i32, i32
  }
  func.func @transform_7(%arg0: i32, %arg1: i32) -> (i32, i32, i32) {
    %c0_i32 = arith.constant 0 : i32
    %c0_i32_0 = arith.constant 0 : i32
    %c0_i32_1 = arith.constant 0 : i32
    return %arg1, %c0_i32, %c0_i32_0 : i32, i32, i32
  }
  func.func @transform_8(%arg0: i32, %arg1: i32) -> (i32, i32, i32) {
    %c0_i32 = arith.constant 0 : i32
    %c0_i32_0 = arith.constant 0 : i32
    %c0_i32_1 = arith.constant 0 : i32
    return %arg1, %c0_i32, %c0_i32_0 : i32, i32, i32
  }
  func.func @transform_9(%arg0: i32, %arg1: i32) -> (i32, i32, i32) {
    %c0_i32 = arith.constant 0 : i32
    %c0_i32_0 = arith.constant 0 : i32
    %c0_i32_1 = arith.constant 0 : i32
    return %arg1, %c0_i32, %c0_i32_0 : i32, i32, i32
  }
  func.func @transform_10(%arg0: i32, %arg1: i32) -> (i32, i32, i32) {
    %c0_i32 = arith.constant 0 : i32
    %c0_i32_0 = arith.constant 0 : i32
    %c0_i32_1 = arith.constant 0 : i32
    return %arg1, %c0_i32, %c0_i32_0 : i32, i32, i32
  }
  func.func @transform_11(%arg0: i32, %arg1: i32) -> (i32, i32, i32) {
    %c0_i32 = arith.constant 0 : i32
    %c0_i32_0 = arith.constant 0 : i32
    %c0_i32_1 = arith.constant 0 : i32
    return %arg1, %c0_i32, %c0_i32_0 : i32, i32, i32
  }
  func.func @transform_12(%arg0: i32, %arg1: i32) -> (i32, i32, i32) {
    %c0_i32 = arith.constant 0 : i32
    %c0_i32_0 = arith.constant 0 : i32
    %c0_i32_1 = arith.constant 0 : i32
    return %arg1, %c0_i32, %c0_i32_0 : i32, i32, i32
  }
  func.func @transform_13(%arg0: i32, %arg1: i32) -> (i32, i32) {
    %c0_i32 = arith.constant 0 : i32
    %c0_i32_0 = arith.constant 0 : i32
    %c0_i32_1 = arith.constant 0 : i32
    return %c0_i32, %c0_i32_0 : i32, i32
  }
  func.func @transform_14(%arg0: i32, %arg1: i32) -> (i32, i32) {
    %c0_i32 = arith.constant 0 : i32
    %c0_i32_0 = arith.constant 0 : i32
    %c0_i32_1 = arith.constant 0 : i32
    return %c0_i32, %c0_i32_0 : i32, i32
  }
  func.func @transform_15(%arg0: i32, %arg1: i32) -> (i32, i32) {
    %c0_i32 = arith.constant 0 : i32
    %c0_i32_0 = arith.constant 0 : i32
    %c0_i32_1 = arith.constant 0 : i32
    return %c0_i32, %c0_i32_0 : i32, i32
  }
  func.func @transform_16(%arg0: i32, %arg1: i32) -> (i32, i32) {
    %c0_i32 = arith.constant 0 : i32
    %c0_i32_0 = arith.constant 0 : i32
    %c0_i32_1 = arith.constant 0 : i32
    return %c0_i32, %c0_i32_0 : i32, i32
  }
  func.func @transform_17(%arg0: i32, %arg1: i32) -> (i32, i32) {
    %c0_i32 = arith.constant 0 : i32
    %c0_i32_0 = arith.constant 0 : i32
    return %arg0, %c0_i32 : i32, i32
  }
}

</mosaic_0001>

<bundles_post_ra>
// kernel: mlp_mixer_forward.1
= control target key start
LH: loop header
LB: loop body
LE: loop exit
PB: predicated region body
PF: predicated region fallthrough
CT: control target
= control target key end

     0   :  { %s2517_s0 = inlined_call_operand.vmem [shape: f32[32,48], index: 0, kind: input, shape index: {}]   ;;  %s2518_s1 = inlined_call_operand.vmem [shape: bf16[48,32], index: 1, kind: input, shape index: {}]   ;;  %s2519_s2 = inlined_call_operand.vmem [shape: f32[1,32], index: 2, kind: input, shape index: {}]   ;;  %s2520_s3 = inlined_call_operand.vmem [shape: f32[2,1,32], index: 3, kind: input, shape index: {}]   ;;  %s2521_s4 = inlined_call_operand.vmem [shape: f32[2,1,32], index: 4, kind: input, shape index: {}]   ;;  %s2522_s5 = inlined_call_operand.vmem [shape: bf16[2,16,16], index: 5, kind: input, shape index: {}]   ;;  %s2523_s6 = inlined_call_operand.vmem [shape: f32[2,16,1], index: 6, kind: input, shape index: {}]   ;;  %s2524_s7 = inlined_call_operand.vmem [shape: bf16[2,16,16], index: 7, kind: input, shape index: {}]   ;;  %s2525_s8 = inlined_call_operand.vmem [shape: f32[2,16,1], index: 8, kind: input, shape index: {}]   ;;  %s2526_s9 = inlined_call_operand.vmem [shape: bf16[2,32,32], index: 9, kind: input, shape index: {}]   ;;  %s2527_s10 = inlined_call_operand.vmem [shape: f32[2,1,32], index: 10, kind: input, shape index: {}]   ;;  %s2528_s11 = inlined_call_operand.vmem [shape: bf16[2,32,32], index: 11, kind: input, shape index: {}]   ;;  %s2529_s12 = inlined_call_operand.vmem [shape: f32[2,1,32], index: 12, kind: input, shape index: {}]   ;;  %s2530_s13 = inlined_call_operand.vmem [shape: f32[1,32], index: 13, kind: input, shape index: {}]   ;;  %s2531_s14 = inlined_call_operand.vmem [shape: f32[1,32], index: 14, kind: input, shape index: {}]   ;;  %s2532_s15 = inlined_call_operand.vmem [shape: bf16[32,128], index: 15, kind: input, shape index: {}]   ;;  %s2533_s16 = inlined_call_operand.vmem [shape: f32[1,128], index: 16, kind: input, shape index: {}]   ;;  %s2534_s17 = inlined_call_operand.hbm [shape: f32[2,128], index: 17, kind: output, shape index: {}]  }
   0x1   :  { %2540 = sst [smem:[#allocation9_spill]] %s2517_s0 }
   0x2   :  { %2541 = sst [smem:[#allocation10_spill]] %s2518_s1 }
   0x3   :  { %2542 = sst [smem:[#allocation11_spill]] %s2522_s5 }
   0x4   :  { %2543 = sst [smem:[#allocation12_spill]] %s2523_s6 }
   0x5   :  { %2544 = sst [smem:[#allocation13_spill]] %s2524_s7 }
   0x6   :  { %2545 = sst [smem:[#allocation14_spill]] %s2525_s8 }
   0x7   :  { %2546 = sst [smem:[#allocation15_spill]] %s2531_s14 }
   0x8   :  { %2547 = sst [smem:[#allocation16_spill]] %s2533_s16 }
   0x9   :  { %2548 = sst [smem:[#allocation17_spill]] %s2534_s17 }
   0xa   :  { %22 = vsyncpa [#allocation4], 0  ;;  %s2179_s24 = smov 0   ;;  %s2181_s25 = smov 0  }
   0xb   :  { %s2183_s26 = smov 0  }
   0xc LB: > { %2549 = sst [smem:[#allocation6_spill]] %s2077_s25  ;;  %s37_s28 = sadd.s32 1, %s2077_s25  ;;  %s2081_s26 = sphi %s2183_s26, %s28_s26   ;;  %s2077_s25 = sphi %s2181_s25, %s2569_s25   ;;  %s2073_s24 = sphi %s2179_s24, %s2568_s24  }
   0xd   : > { %2550 = sst [smem:[#allocation7_spill]] %s2081_s26  ;;  %p38_p0 = scmp.ge.s32.totalorder %s37_s28, 2 }
   0xe   : > { %p1803_p1 = scmp.ge.s32.totalorder %s2081_s26, 1  ;;  %p593_p2 = scmp.lt.s32.totalorder %s2081_s26, 3 }
   0xf   : > { %s2571_s28 = smov (%p38_p0, %s37_s28), 0 }
  0x10   : > { %2551 = sst [smem:[#allocation8_spill]] %s2571_s28  ;;  %p594_p3 = pnand %p1803_p1, %p593_p2 }
  0x11   : > { %p688_p4 = scmp.lt.s32.totalorder (!%p594_p3), %s2073_s24, 1  ;;  %s2552_s5 = sld [smem:[#allocation11_spill]] (!%p594_p3) }
  0x12   : > { %597 = sbr.rel (%p594_p3) target bundleno = 2015 (0x7df), region = 88  ;;  %s2553_s6 = sld [smem:[#allocation12_spill]] (!%p594_p3) }
  0x13   : > { %s2554_s7 = sld [smem:[#allocation13_spill]] (!%p594_p3)  ;;  %s2555_s8 = sld [smem:[#allocation14_spill]] (!%p594_p3) }
  0x14   : > { %p1816_p5 = scmp.ne.s32.totalorder (!%p594_p3), %s2073_s24, 0 }
  0x19   : > { %s2202_s29 = scalar_select %p688_p4, %s2073_s24, 1 }
  0x1a   : > { %734 = sbr.rel (%p1816_p5) target bundleno = 263 (0x107), region = 92  ;;  %s2556_s20 = sld [smem:[#allocation10_spill]] (!%p1816_p5)  ;;  %vm772_vm0 = vcmask (!%p1816_p5), 392192   ;;  %v1817_v9 = vld [vmem:[%s2519_s2] ss:$0 sm:$0xff] (!%p1816_p5)  ;;  %vm828_vm1 = vcmask (!%p1816_p5), 261120  }
  0x1b   : > { %s1852_s21 = sshll.u32 %s2202_s29, 3  ;;  %s1853_s22 = sshll.u32 %s2202_s29, 4 }
  0x1c   : > { %s2217_s28 = scalar_lea.vmem %s2552_s5, %s1852_s21  ;;  %s2222_s0 = scalar_lea.vmem %s2553_s6, %s1853_s22 }
  0x1d   : > { %s2227_s18 = scalar_lea.vmem %s2554_s7, %s1852_s21  ;;  %s2232_s1 = scalar_lea.vmem %s2555_s8, %s1853_s22 }
  0x1e   : > { %s2237_s27 = scalar_lea.vmem %s2526_s9, %s1853_s22  ;;  %s721_s17 = scalar_lea.vmem %s2527_s10, %s2202_s29 }
  0x1f   : > { %s2246_s26 = scalar_lea.vmem %s2528_s11, %s1853_s22  ;;  %s729_s16 = scalar_lea.vmem %s2529_s12, %s2202_s29 }
  0x20   : > { %v1976_v0 = vld [vmem:[%s2556_s20] sm:$0xff] (!%p1816_p5)   ;;  %v1977_v1 = vld [vmem:[%s2556_s20 + $0x8] sm:$0xff] (!%p1816_p5)   ;;  %s2557_s22 = sld [smem:[#allocation9_spill]] (!%p1816_p5)  ;;  %v1978_v4 = vld [vmem:[%s2556_s20 + $0x10] sm:$0xff] (!%p1816_p5)  }
  0x21   : > { %1882 = vmatprep.subr.bf16.mxu0 %v1976_v0 }
  0x22   : > { %1883 = vmatpush3.bf16.msra.mxu0 %v1976_v0 }
  0x23   : > { %1884 = vmatprep.subr.bf16.mxu0 %v1977_v1 }
  0x26   : > { %v735_v2 = vld [vmem:[%s2557_s22] sm:$0xff]  ;;  %v736_v3 = vld [vmem:[%s2557_s22 + $0x8] sm:$0xff]  ;;  %1885 = vmatpush3.bf16.msra.mxu0 %v1977_v1  ;;  %v737_v6 = vld [vmem:[%s2557_s22 + $0x10] sm:$0xff] }
  0x27   : > { %v745_v5 = vpack.c.bf16 %v736_v3, %v735_v2  ;;  %v738_v7 = vld [vmem:[%s2557_s22 + $0x18] sm:$0xff]  ;;  %1886 = vmatprep.subr.bf16.mxu0 %v1978_v4 }
  0x28   : > { %v746_v8 = vpack.c.bf16 %v738_v7, %v737_v6 }
  0x29   : > { %1888 = vmatprep.mubr.msk.bf16.mxu0 %vm772_vm0, %v745_v5 }
  0x2a   : > { %1887 = vmatpush3.bf16.msra.mxu0 %v1978_v4 }
  0x2d   : > { %1889 = vmatmul.mubr.msk.bf16.vlgmr.msra.gmra.mrb[0].mxu0 %vm772_vm0, %v746_v8 }
 0x100   : > { %v1890_v10 = vpop.f32.mrb[0].mxu0 }
 0x101   : > { %v822_v11 = vadd.f32 %v1890_v10, %v1817_v9  ;;  %v813_v12 = vpop.f32.mrb[1].mxu0 }
 0x102   : > { %v814_v13 = vadd.f32 %v1817_v9, %v813_v12  ;;  %v1891_v14 = vpop.f32.mrb[2].mxu0 }
 0x103   : > { %831 = vst.msk [vmem:[#allocation2 + $0x10] sm:$0xff] %vm828_vm1, %v822_v11  ;;  %v825_v15 = vadd.f32 %v1891_v14, %v1817_v9  ;;  %v816_v16 = vpop.f32.mrb[3].mxu0 }
 0x104   : > { %829 = vst.msk [vmem:[#allocation2] sm:$0xff] %vm828_vm1, %v814_v13  ;;  %v817_v17 = vadd.f32 %v1817_v9, %v816_v16 }
 0x105   : > { %832 = vst.msk [vmem:[#allocation2 + $0x18] sm:$0xff] %vm828_vm1, %v825_v15 }
 0x106   : > { %830 = vst.msk [vmem:[#allocation2 + $0x8] sm:$0xff] %vm828_vm1, %v817_v17 }
 0x107 PF: > { %vm851_vm2 = vcmask 261120   ;;  %v2083_v34 = vmov 0.0   ;;  %vm2084_vm3 = vmmov 0   ;;  %v928_v35 = vld [vmem:[%s2222_s0 + $0x8] sm:$0xff]  ;;  %v927_v36 = vld [vmem:[%s2222_s0] sm:$0xff]  ;;  %v2085_v37 = vmov 0   ;;  %s2558_s23 = scalar_lea.vmem %s2520_s3, %s2202_s29  ;;  %s2559_s30 = scalar_lea.vmem %s2521_s4, %s2202_s29 }
 0x108   : > { %1892 = vmatprep.subr.bf16.mxu0 %v2083_v34  ;;  %1898 = vmatprep.subr.bf16.mxu1 %v2083_v34  ;;  %v931_v38 = vld [vmem:[%s2232_s1] sm:$0xff]  ;;  %v932_v39 = vld [vmem:[%s2232_s1 + $0x8] sm:$0xff]  ;;  %vm949_vm4 = vcmask 130048   ;;  %p1841_p6 = scmp.ne.s32.totalorder %s2073_s24, 1 }
 0x109   : > { %1894 = vmatprep.mubr.msk.bf16.mxu0 %vm2084_vm3, %v2083_v34  ;;  %1900 = vmatprep.mubr.msk.bf16.mxu1 %vm2084_vm3, %v2083_v34  ;;  %v2321_v11 = vld [vmem:[%s2558_s23] ss:$0 sm:$0xff]  ;;  %vm2087_vm5 = vmmov (!%p1841_p6), 0   ;;  %s2560_s5 = sld [smem:[#allocation15_spill]] (!%p1841_p6)  ;;  %vm1570_vm6 = vcmask (!%p1841_p6), 1041409   ;;  %s2561_s1 = sld [smem:[#allocation16_spill]] (!%p1841_p6) }
 0x10a   : > { %v2291_v26 = vld [vmem:[#allocation2 + $0x10] sm:$0xff]  ;;  %1980 = vset.pattern.permute.xlu1 %v2085_v37  ;;  %1979 = vset.pattern.permute.xlu0 %v2085_v37  ;;  %v2330_v16 = vld [vmem:[%s2559_s30] ss:$0 sm:$0xff] }
 0x10b   : > { %v2277_v18 = vld [vmem:[#allocation2] sm:$0xff]  ;;  %v858_v28 = vsel %vm851_vm2, %v2291_v26, 0.0  ;;  %v871_v29 = vmul.f32 %v2291_v26, %v2291_v26 }
 0x10c   : > { %v852_v20 = vsel %vm851_vm2, %v2277_v18, 0.0  ;;  %v869_v21 = vmul.f32 %v2277_v18, %v2277_v18  ;;  %v2293_v27 = vld [vmem:[#allocation2 + $0x18] sm:$0xff] }
 0x10d   : > { %v2279_v19 = vld [vmem:[#allocation2 + $0x8] sm:$0xff]  ;;  %853 = vadd.xlane.f32.xlu0 %v852_v20  ;;  %v861_v30 = vsel %vm851_vm2, %v2293_v27, 0.0  ;;  %v872_v31 = vmul.f32 %v2293_v27, %v2293_v27  ;;  %v879_v32 = vsel %vm851_vm2, %v871_v29, 0.0 }
 0x10e   : > { %v870_v22 = vmul.f32 %v2279_v19, %v2279_v19  ;;  %v873_v23 = vsel %vm851_vm2, %v869_v21, 0.0  ;;  %v855_v24 = vsel %vm851_vm2, %v2279_v19, 0.0 }
 0x10f   : > { %874 = vadd.xlane.f32.xlu1 %v873_v23  ;;  %v882_v33 = vsel %vm851_vm2, %v872_v31, 0.0 }
 0x110   : > { %v876_v25 = vsel %vm851_vm2, %v870_v22, 0.0 }
 0x111   : > { %856 = vadd.xlane.f32.xlu0 %v855_v24 }
 0x113   : > { %877 = vadd.xlane.f32.xlu1 %v876_v25 }
 0x115   : > { %859 = vadd.xlane.f32.xlu0 %v858_v28 }
 0x117   : > { %862 = vadd.xlane.f32.xlu1 %v861_v30  ;;  %v1981_v30 = vld [vmem:[%s2217_s28] sm:$0xff]  }
 0x119   : > { %880 = vadd.xlane.f32.xlu0 %v879_v32 }
 0x11b   : > { %883 = vadd.xlane.f32.xlu1 %v882_v33 }
 0x12c   : > { %941 = vperm.xlu1 %1980, %v928_v35  }
 0x12f   : > { %936 = vperm.xlu0 %1979, %v927_v36  }
 0x130   : > { %1058 = vperm.xlu1 %1980, %v931_v38  }
 0x134   : > { %1063 = vperm.xlu1 %1980, %v932_v39  }
 0x19a   : > { %v854_v40 = vpop.xlane.xlu0 %853 }
 0x19b   : > { %v865_v41 = vmul.f32 0.03125, %v854_v40 }
 0x19c   : > { %v875_v42 = vpop.xlane.xlu1 %874 }
 0x19d   : > { %v889_v43 = vmul.f32 %v865_v41, %v865_v41  ;;  %v885_v44 = vmul.f32 0.03125, %v875_v42  ;;  %v901_v7 = vsub.f32 %v2277_v18, %v865_v41 }
 0x19e   : > { %v857_v45 = vpop.xlane.xlu0 %856 }
 0x19f   : > { %v893_v46 = vsub.f32 %v885_v44, %v889_v43  ;;  %v866_v47 = vmul.f32 0.03125, %v857_v45 }
 0x1a0   : > { %v878_v48 = vpop.xlane.xlu1 %877 }
 0x1a1   : > { %v897_v49 = vmax.f32 %v893_v46, 0.0  ;;  %v890_v50 = vmul.f32 %v866_v47, %v866_v47  ;;  %v886_v51 = vmul.f32 0.03125, %v878_v48  ;;  %v902_v12 = vsub.f32 %v2279_v19, %v866_v47 }
 0x1a2   : > { %v860_v52 = vpop.xlane.xlu0 %859 }
 0x1a3   : > { %v905_v53 = vadd.f32 1e-05, %v897_v49  ;;  %v894_v54 = vsub.f32 %v886_v51, %v890_v50  ;;  %v867_v55 = vmul.f32 0.03125, %v860_v52 }
 0x1a4   : > { %v863_v56 = vpop.xlane.xlu1 %862 }
 0x1a5   : > { %1987 = vrsqrt.f32 %v905_v53  ;;  %v898_v57 = vmax.f32 %v894_v54, 0.0  ;;  %v891_v58 = vmul.f32 %v867_v55, %v867_v55  ;;  %v868_v59 = vmul.f32 0.03125, %v863_v56 }
 0x1a6   : > { %v881_v60 = vpop.xlane.xlu0 %880  ;;  %v903_v20 = vsub.f32 %v2291_v26, %v867_v55 }
 0x1a7   : > { %v906_v61 = vadd.f32 1e-05, %v898_v57  ;;  %v887_v62 = vmul.f32 0.03125, %v881_v60  ;;  %v892_v63 = vmul.f32 %v868_v59, %v868_v59  ;;  %v904_v24 = vsub.f32 %v2293_v27, %v868_v59 }
 0x1a8   : > { %v884_v0 = vpop.xlane.xlu1 %883 }
 0x1a9   : > { %1989 = vrsqrt.f32 %v906_v61  ;;  %v895_v1 = vsub.f32 %v887_v62, %v891_v58  ;;  %v888_v2 = vmul.f32 0.03125, %v884_v0 }
 0x1ab   : > { %v899_v3 = vmax.f32 %v895_v1, 0.0  ;;  %v896_v4 = vsub.f32 %v888_v2, %v892_v63  ;;  %v1982_v2 = vld [vmem:[%s2227_s18] sm:$0xff]  }
 0x1ac   : > { %v942_v42 = vpop.permute.xlu1 %941 }
 0x1ad   : > { %v907_v5 = vadd.f32 1e-05, %v899_v3  ;;  %v900_v6 = vmax.f32 %v896_v4, 0.0 }
 0x1ae   : > { %v937_v38 = vpop.permute.xlu0 %936 }
 0x1af   : > { %v1988_v8 = vpop.eup %1987  ;;  %1991 = vrsqrt.f32 %v907_v5  ;;  %v908_v9 = vadd.f32 1e-05, %v900_v6 }
 0x1b0   : > { %v913_v10 = vmul.f32 %v1988_v8, %v901_v7 }
 0x1b1   : > { %1993 = vrsqrt.f32 %v908_v9 }
 0x1b2   : > { %v917_v15 = vmul.f32 %v2321_v11, %v913_v10 }
 0x1b3   : > { %v1990_v13 = vpop.eup %1989 }
 0x1b4   : > { %v914_v14 = vmul.f32 %v1990_v13, %v902_v12  ;;  %v921_v21 = vadd.f32 %v2330_v16, %v917_v15  ;;  %v1059_v12 = vpop.permute.xlu1 %1058 }
 0x1b6   : > { %v918_v17 = vmul.f32 %v2321_v11, %v914_v14 }
 0x1b8   : > { %v922_v22 = vadd.f32 %v2330_v16, %v918_v17 }
 0x1b9   : > { %v1992_v23 = vpop.eup %1991 }
 0x1ba   : > { %v933_v25 = vpack.c.bf16 %v922_v22, %v921_v21  ;;  %v915_v28 = vmul.f32 %v1992_v23, %v903_v20  ;;  %v1064_v23 = vpop.permute.xlu1 %1063 }
 0x1bb   : > { %v1994_v29 = vpop.eup %1993 }
 0x1bc   : > { %1893 = vmatpush3.bf16.msra.mxu0 %v933_v25  ;;  %v916_v31 = vmul.f32 %v1994_v29, %v904_v24  ;;  %v919_v32 = vmul.f32 %v2321_v11, %v915_v28 }
 0x1bd   : > { %1904 = vmatprep.subr.bf16.mxu0 %v2083_v34 }
 0x1be   : > { %v920_v33 = vmul.f32 %v2321_v11, %v916_v31  ;;  %v923_v35 = vadd.f32 %v2330_v16, %v919_v32 }
 0x1bf   : > { %1895 = vmatmul.mubr.msk.bf16.vlgmr.msra.gmra.mrb[0].mxu0 %vm949_vm4, %v1981_v30 }
 0x1c0   : > { %v924_v36 = vadd.f32 %v2330_v16, %v920_v33  ;;  %1906 = vmatprep.mubr.msk.bf16.mxu0 %vm2084_vm3, %v2083_v34 }
 0x1c2   : > { %v1070_v37 = vpack.c.bf16 %v924_v36, %v923_v35 }
 0x1c4   : > { %1905 = vmatpush3.bf16.msra.mxu0 %v1070_v37 }
 0x1c7   : > { %1907 = vmatmul.mubr.msk.bf16.vlgmr.msra.gmra.mrb[4].mxu0 %vm949_vm4, %v1981_v30 }
 0x292   : > { %v987_v39 = vpop.f32.mrb[0].mxu0 }
 0x293   : > { %v988_v40 = vadd.f32 %v987_v39, %v937_v38  ;;  %v1896_v41 = vpop.f32.mrb[1].mxu0 }
 0x294   : > { %v990_v43 = vpop.f32.mrb[2].mxu0 }
 0x295   : > { %v996_v44 = vmul.f32 0.70710677, %v988_v40  ;;  %v991_v45 = vadd.f32 %v990_v43, %v942_v42  ;;  %v1897_v46 = vpop.f32.mrb[3].mxu0  ;;  %v994_v59 = vmul.f32 0.5, %v988_v40 }
 0x297   : > { %1995 = verf.f32 %v996_v44  ;;  %v997_v47 = vmul.f32 0.70710677, %v991_v45  ;;  %v995_v60 = vmul.f32 0.5, %v991_v45 }
 0x299   : > { %1997 = verf.f32 %v997_v47  ;;  %v1983_v47 = vld [vmem:[%s2237_s27] sm:$0xff]  }
 0x29a   : > { %v1105_v48 = vpop.f32.mrb[4].mxu0  ;;  %1916 = vmatprep.subr.bf16.mxu0 %v1983_v47 }
 0x29b   : > { %v1106_v49 = vadd.f32 %v1105_v48, %v937_v38  ;;  %v1908_v50 = vpop.f32.mrb[5].mxu0  ;;  %v1984_v48 = vld [vmem:[%s2237_s27 + $0x8] sm:$0xff]   ;;  %1917 = vmatpush3.bf16.msra.mxu0 %v1983_v47  ;;  %v1831_v47 = vld [vmem:[%s721_s17] ss:$0 sm:$0xff] }
 0x29c   : > { %v1108_v51 = vpop.f32.mrb[6].mxu0  ;;  %1918 = vmatprep.subr.bf16.mxu0 %v1984_v48 }
 0x29d   : > { %v1114_v52 = vmul.f32 0.70710677, %v1106_v49  ;;  %v1109_v53 = vadd.f32 %v1108_v51, %v942_v42  ;;  %v1909_v54 = vpop.f32.mrb[7].mxu0  ;;  %v1112_v5 = vmul.f32 0.5, %v1106_v49 }
 0x29f   : > { %1999 = verf.f32 %v1114_v52  ;;  %v1115_v55 = vmul.f32 0.70710677, %v1109_v53  ;;  %v1113_v6 = vmul.f32 0.5, %v1109_v53  ;;  %1919 = vmatpush3.bf16.msra.mxu0 %v1984_v48 }
 0x2a1   : > { %v1996_v56 = vpop.eup %1995  ;;  %2001 = verf.f32 %v1115_v55 }
 0x2a2   : > { %v1000_v57 = vadd.f32 1.0, %v1996_v56 }
 0x2a3   : > { %v1998_v58 = vpop.eup %1997 }
 0x2a4   : > { %v1001_v61 = vadd.f32 1.0, %v1998_v58  ;;  %v1002_v62 = vmul.f32 %v1000_v57, %v994_v59 }
 0x2a6   : > { %v1003_v63 = vmul.f32 %v1001_v61, %v995_v60 }
 0x2a8   : > { %v1004_v0 = vpack.c.bf16 %v1003_v63, %v1002_v62 }
 0x2a9   : > { %v2000_v1 = vpop.eup %1999 }
 0x2aa   : > { %v1118_v3 = vadd.f32 1.0, %v2000_v1  ;;  %1899 = vmatpush3.bf16.msra.mxu1 %v1004_v0 }
 0x2ab   : > { %v2002_v4 = vpop.eup %2001  ;;  %1910 = vmatprep.subr.bf16.mxu1 %v2083_v34 }
 0x2ac   : > { %v1119_v7 = vadd.f32 1.0, %v2002_v4  ;;  %v1120_v8 = vmul.f32 %v1118_v3, %v1112_v5 }
 0x2ad   : > { %1901 = vmatmul.mubr.msk.bf16.vlgmr.msra.gmra.mrb[0].mxu1 %vm949_vm4, %v1982_v2 }
 0x2ae   : > { %v1121_v9 = vmul.f32 %v1119_v7, %v1113_v6  ;;  %1912 = vmatprep.mubr.msk.bf16.mxu1 %vm2084_vm3, %v2083_v34 }
 0x2b0   : > { %v1122_v10 = vpack.c.bf16 %v1121_v9, %v1120_v8 }
 0x2b2   : > { %1911 = vmatpush3.bf16.msra.mxu1 %v1122_v10 }
 0x2b5   : > { %1913 = vmatmul.mubr.msk.bf16.vlgmr.msra.gmra.mrb[4].mxu1 %vm949_vm4, %v1982_v2 }
 0x380   : > { %v1047_v13 = vpop.f32.mrb[0].mxu1 }
 0x381   : > { %v1054_v14 = vadd.f32 %v1047_v13, %v2277_v18  ;;  %v1902_v15 = vpop.f32.mrb[1].mxu1 }
 0x382   : > { %v1050_v17 = vpop.f32.mrb[2].mxu1 }
 0x383   : > { %v1066_v20 = vadd.f32 %v1059_v12, %v1054_v14  ;;  %v1055_v21 = vadd.f32 %v1050_v17, %v2279_v19  ;;  %v1903_v22 = vpop.f32.mrb[3].mxu1 }
 0x385   : > { %1068 = vst.msk [vmem:[#allocation2] sm:$0xff] %vm851_vm2, %v1066_v20  ;;  %v1067_v24 = vadd.f32 %v1064_v23, %v1055_v21 }
 0x387   : > { %1069 = vst.msk [vmem:[#allocation2 + $0x8] sm:$0xff] %vm851_vm2, %v1067_v24 }
 0x388   : > { %v1157_v34 = vpop.f32.mrb[4].mxu1 }
 0x389   : > { %v1164_v25 = vadd.f32 %v1157_v34, %v2291_v26  ;;  %v1914_v28 = vpop.f32.mrb[5].mxu1 }
 0x38a   : > { %v1160_v29 = vpop.f32.mrb[6].mxu1 }
 0x38b   : > { %v1166_v30 = vadd.f32 %v1164_v25, %v1059_v12  ;;  %v1165_v18 = vadd.f32 %v1160_v29, %v2293_v27  ;;  %v1915_v31 = vpop.f32.mrb[7].mxu1 }
 0x38c   : > { %v2359_v32 = vld [vmem:[#allocation2] sm:$0xff] }
 0x38d   : > { %1168 = vst.msk [vmem:[#allocation2 + $0x10] sm:$0xff] %vm851_vm2, %v1166_v30  ;;  %v1167_v19 = vadd.f32 %v1165_v18, %v1064_v23  ;;  %v1174_v33 = vsel %vm851_vm2, %v2359_v32, 0.0  ;;  %v1190_v35 = vmul.f32 %v2359_v32, %v2359_v32 }
 0x38e   : > { %1175 = vadd.xlane.f32.xlu1 %v1174_v33  ;;  %v2366_v36 = vld [vmem:[#allocation2 + $0x8] sm:$0xff] }
 0x38f   : > { %1169 = vst.msk [vmem:[#allocation2 + $0x18] sm:$0xff] %vm851_vm2, %v1167_v19  ;;  %v1177_v26 = vsel %vm851_vm2, %v2366_v36, 0.0  ;;  %v1194_v27 = vsel %vm851_vm2, %v1190_v35, 0.0  ;;  %v1191_v37 = vmul.f32 %v2366_v36, %v2366_v36 }
 0x390   : > { %1178 = vadd.xlane.f32.xlu0 %v1177_v26 }
 0x391   : > { %v1197_v39 = vsel %vm851_vm2, %v1191_v37, 0.0 }
 0x392   : > { %1195 = vadd.xlane.f32.xlu1 %v1194_v27 }
 0x394   : > { %v2374_v38 = vld [vmem:[#allocation2 + $0x10] sm:$0xff] }
 0x395   : > { %v1192_v40 = vmul.f32 %v2374_v38, %v2374_v38  ;;  %v1180_v42 = vsel %vm851_vm2, %v2374_v38, 0.0 }
 0x396   : > { %1198 = vadd.xlane.f32.xlu1 %v1197_v39  ;;  %v2382_v43 = vld [vmem:[#allocation2 + $0x18] sm:$0xff] }
 0x397   : > { %v1200_v41 = vsel %vm851_vm2, %v1192_v40, 0.0  ;;  %v1183_v44 = vsel %vm851_vm2, %v2382_v43, 0.0  ;;  %v1193_v45 = vmul.f32 %v2382_v43, %v2382_v43 }
 0x398   : > { %1201 = vadd.xlane.f32.xlu0 %v1200_v41 }
 0x399   : > { %v1203_v46 = vsel %vm851_vm2, %v1193_v45, 0.0  ;;  %v1985_v45 = vld [vmem:[%s2246_s26] sm:$0xff]  }
 0x39a   : > { %1181 = vadd.xlane.f32.xlu1 %v1180_v42  ;;  %1924 = vmatprep.subr.bf16.mxu1 %v1985_v45 }
 0x39b   : > { %1925 = vmatpush3.bf16.msra.mxu1 %v1985_v45  ;;  %v2020_v45 = vld [vmem:[%s2532_s15 + $0x8] sm:$0xff] (!%p1841_p6)  }
 0x39e   : > { %1184 = vadd.xlane.f32.xlu1 %v1183_v44 }
 0x3a2   : > { %1204 = vadd.xlane.f32.xlu1 %v1203_v46  ;;  %v1986_v46 = vld [vmem:[%s2246_s26 + $0x8] sm:$0xff]  }
 0x3a3   : > { %1926 = vmatprep.subr.bf16.mxu1 %v1986_v46 }
 0x3a4   : > { %1927 = vmatpush3.bf16.msra.mxu1 %v1986_v46 }
 0x41b   : > { %v1176_v49 = vpop.xlane.xlu1 %1175 }
 0x41c   : > { %v1186_v50 = vmul.f32 0.03125, %v1176_v49 }
 0x41d   : > { %v1179_v51 = vpop.xlane.xlu0 %1178 }
 0x41e   : > { %v1210_v53 = vmul.f32 %v1186_v50, %v1186_v50  ;;  %v1187_v54 = vmul.f32 0.03125, %v1179_v51  ;;  %v1222_v15 = vsub.f32 %v2359_v32, %v1186_v50 }
 0x41f   : > { %v1196_v52 = vpop.xlane.xlu1 %1195 }
 0x420   : > { %v1206_v55 = vmul.f32 0.03125, %v1196_v52  ;;  %v1211_v58 = vmul.f32 %v1187_v54, %v1187_v54  ;;  %v1223_v23 = vsub.f32 %v2366_v36, %v1187_v54 }
 0x422   : > { %v1214_v56 = vsub.f32 %v1206_v55, %v1210_v53 }
 0x423   : > { %v1199_v57 = vpop.xlane.xlu1 %1198 }
 0x424   : > { %v1218_v59 = vmax.f32 %v1214_v56, 0.0  ;;  %v1207_v60 = vmul.f32 0.03125, %v1199_v57 }
 0x425   : > { %v1202_v63 = vpop.xlane.xlu0 %1201 }
 0x426   : > { %v1226_v61 = vadd.f32 1e-05, %v1218_v59  ;;  %v1215_v62 = vsub.f32 %v1207_v60, %v1211_v58  ;;  %v1208_v4 = vmul.f32 0.03125, %v1202_v63 }
 0x427   : > { %v1182_v0 = vpop.xlane.xlu1 %1181 }
 0x428   : > { %2003 = vrsqrt.f32 %v1226_v61  ;;  %v1219_v1 = vmax.f32 %v1215_v62, 0.0  ;;  %v1188_v2 = vmul.f32 0.03125, %v1182_v0 }
 0x42a   : > { %v1227_v3 = vadd.f32 1e-05, %v1219_v1  ;;  %v1212_v5 = vmul.f32 %v1188_v2, %v1188_v2  ;;  %v1224_v19 = vsub.f32 %v2374_v38, %v1188_v2 }
 0x42b   : > { %v1185_v6 = vpop.xlane.xlu1 %1184 }
 0x42c   : > { %2005 = vrsqrt.f32 %v1227_v3  ;;  %v1216_v7 = vsub.f32 %v1208_v4, %v1212_v5  ;;  %v1189_v8 = vmul.f32 0.03125, %v1185_v6 }
 0x42e   : > { %v1220_v9 = vmax.f32 %v1216_v7, 0.0  ;;  %v1213_v13 = vmul.f32 %v1189_v8, %v1189_v8  ;;  %v1225_v26 = vsub.f32 %v2382_v43, %v1189_v8 }
 0x42f   : > { %v1205_v10 = vpop.xlane.xlu1 %1204 }
 0x430   : > { %v1228_v12 = vadd.f32 1e-05, %v1220_v9  ;;  %v1209_v14 = vmul.f32 0.03125, %v1205_v10 }
 0x432   : > { %v2004_v17 = vpop.eup %2003  ;;  %2007 = vrsqrt.f32 %v1228_v12  ;;  %v1217_v20 = vsub.f32 %v1209_v14, %v1213_v13  ;;  %v1840_v14 = vld [vmem:[%s729_s16] ss:$0 sm:$0xff] }
 0x433   : > { %v1234_v21 = vmul.f32 %v2004_v17, %v1222_v15 }
 0x434   : > { %v1221_v22 = vmax.f32 %v1217_v20, 0.0 }
 0x435   : > { %v1238_v28 = vmul.f32 %v2321_v11, %v1234_v21 }
 0x436   : > { %v2006_v24 = vpop.eup %2005  ;;  %v1229_v34 = vadd.f32 1e-05, %v1221_v22 }
 0x437   : > { %v1235_v25 = vmul.f32 %v2006_v24, %v1223_v23  ;;  %v1242_v30 = vadd.f32 %v2330_v16, %v1238_v28 }
 0x438   : > { %2009 = vrsqrt.f32 %v1229_v34 }
 0x439   : > { %v1239_v29 = vmul.f32 %v2321_v11, %v1235_v25 }
 0x43b   : > { %v1243_v18 = vadd.f32 %v2330_v16, %v1239_v29 }
 0x43c   : > { %v2008_v31 = vpop.eup %2007 }
 0x43d   : > { %v1250_v33 = vpack.c.bf16 %v1243_v18, %v1242_v30  ;;  %v1236_v35 = vmul.f32 %v2008_v31, %v1224_v19 }
 0x43f   : > { %1920 = vmatprep.mubr.msk.bf16.mxu0 %vm851_vm2, %v1250_v33  ;;  %v1240_v37 = vmul.f32 %v2321_v11, %v1236_v35 }
 0x441   : > { %v1244_v41 = vadd.f32 %v2330_v16, %v1240_v37 }
 0x442   : > { %v2010_v27 = vpop.eup %2009 }
 0x443   : > { %v1237_v39 = vmul.f32 %v2010_v27, %v1225_v26 }
 0x445   : > { %v1241_v40 = vmul.f32 %v2321_v11, %v1237_v39 }
 0x447   : > { %v1245_v42 = vadd.f32 %v2330_v16, %v1241_v40 }
 0x449   : > { %v1251_v44 = vpack.c.bf16 %v1245_v42, %v1244_v41  ;;  %v2019_v42 = vld [vmem:[%s2532_s15] sm:$0xff] (!%p1841_p6)  }
 0x44b   : > { %1921 = vmatmul.mubr.msk.bf16.vlgmr.msra.gmra.mrb[8].mxu0 %vm851_vm2, %v1251_v44  ;;  %v2086_v44 = vmov (!%p1841_p6), 0.0  }
 0x44c   : > { %1932 = vmatprep.subr.bf16.mxu0 (!%p1841_p6), %v2086_v44  ;;  %1936 = vmatprep.mubr.msk.bf16.mxu0 (!%p1841_p6), %vm2087_vm5, %v2086_v44 }
 0x44d   : > { %1933 = vmatpush3.bf16.msra.mxu0 (!%p1841_p6), %v2019_v42 }
 0x44e   : > { %1934 = vmatprep.subr.bf16.mxu0 (!%p1841_p6), %v2086_v44 }
 0x451   : > { %1935 = vmatpush3.bf16.msra.mxu0 (!%p1841_p6), %v2020_v45 }
 0x51e   : > { %v1922_v48 = vpop.f32.mrb[8].mxu0 }
 0x51f   : > { %v1320_v11 = vadd.f32 %v1922_v48, %v1831_v47  ;;  %v1311_v49 = vpop.f32.mrb[9].mxu0 }
 0x520   : > { %v1312_v50 = vadd.f32 %v1831_v47, %v1311_v49  ;;  %v1923_v51 = vpop.f32.mrb[10].mxu0 }
 0x521   : > { %v1332_v16 = vmul.f32 0.70710677, %v1320_v11  ;;  %v1323_v52 = vadd.f32 %v1923_v51, %v1831_v47  ;;  %v1314_v53 = vpop.f32.mrb[11].mxu0  ;;  %v1328_v0 = vmul.f32 0.5, %v1320_v11 }
 0x522   : > { %v1330_v54 = vmul.f32 0.70710677, %v1312_v50  ;;  %v1315_v55 = vadd.f32 %v1831_v47, %v1314_v53  ;;  %v1326_v3 = vmul.f32 0.5, %v1312_v50 }
 0x523   : > { %2011 = verf.f32 %v1332_v16  ;;  %v1333_v56 = vmul.f32 0.70710677, %v1323_v52  ;;  %v1329_v1 = vmul.f32 0.5, %v1323_v52 }
 0x524   : > { %2013 = verf.f32 %v1330_v54  ;;  %v1331_v57 = vmul.f32 0.70710677, %v1315_v55  ;;  %v1327_v4 = vmul.f32 0.5, %v1315_v55 }
 0x525   : > { %2015 = verf.f32 %v1333_v56 }
 0x526   : > { %2017 = verf.f32 %v1331_v57 }
 0x52d   : > { %v2012_v58 = vpop.eup %2011 }
 0x52e   : > { %v2014_v59 = vpop.eup %2013  ;;  %v1340_v60 = vadd.f32 1.0, %v2012_v58 }
 0x52f   : > { %v2016_v61 = vpop.eup %2015  ;;  %v1338_v62 = vadd.f32 1.0, %v2014_v59 }
 0x530   : > { %v2018_v63 = vpop.eup %2017  ;;  %v1341_v2 = vadd.f32 1.0, %v2016_v61  ;;  %v1344_v6 = vmul.f32 %v1340_v60, %v1328_v0 }
 0x531   : > { %v1339_v5 = vadd.f32 1.0, %v2018_v63  ;;  %v1342_v8 = vmul.f32 %v1338_v62, %v1326_v3 }
 0x532   : > { %v1345_v7 = vmul.f32 %v1341_v2, %v1329_v1 }
 0x533   : > { %v1343_v9 = vmul.f32 %v1339_v5, %v1327_v4 }
 0x534   : > { %v1351_v10 = vpack.c.bf16 %v1345_v7, %v1344_v6 }
 0x535   : > { %v1350_v12 = vpack.c.bf16 %v1343_v9, %v1342_v8 }
 0x537   : > { %1928 = vmatprep.mubr.msk.bf16.mxu1 %vm851_vm2, %v1350_v12 }
 0x538   : > { %1929 = vmatmul.mubr.msk.bf16.vlgmr.msra.gmra.mrb[8].mxu1 %vm851_vm2, %v1351_v10 }
 0x60b   : > { %v1930_v13 = vpop.f32.mrb[8].mxu1 }
 0x60c   : > { %v1421_v15 = vadd.f32 %v1930_v13, %v2374_v38  ;;  %v1404_v17 = vpop.f32.mrb[9].mxu1 }
 0x60d   : > { %v1419_v20 = vadd.f32 %v1404_v17, %v2359_v32  ;;  %v1931_v21 = vpop.f32.mrb[10].mxu1  ;;  %1441 = sbr.rel (%p1841_p6) target bundleno = 1980 (0x7bc), region = 96  ;;  %v1842_v17 = vld [vmem:[%s2530_s13] ss:$0 sm:$0xff] (!%p1841_p6) }
 0x60e   : > { %v1432_v22 = vadd.f32 %v1840_v14, %v1421_v15  ;;  %v1422_v23 = vadd.f32 %v1931_v21, %v2382_v43  ;;  %v1407_v24 = vpop.f32.mrb[11].mxu1 }
 0x60f   : > { %v1430_v34 = vadd.f32 %v1840_v14, %v1419_v20  ;;  %v1420_v25 = vadd.f32 %v1407_v24, %v2366_v36 }
 0x610   : > { %1436 = vst.msk [vmem:[#allocation2 + $0x10] sm:$0xff] %vm851_vm2, %v1432_v22  ;;  %v1433_v28 = vadd.f32 %v1840_v14, %v1422_v23  ;;  %v1843_v23 = vld [vmem:[%s2560_s5] ss:$0 sm:$0xff] (!%p1841_p6) }
 0x611   : > { %1434 = vst.msk [vmem:[#allocation2] sm:$0xff] %vm851_vm2, %v1430_v34  ;;  %v1431_v29 = vadd.f32 %v1840_v14, %v1420_v25 }
 0x612   : > { %1437 = vst.msk [vmem:[#allocation2 + $0x18] sm:$0xff] %vm851_vm2, %v1433_v28 }
 0x613   : > { %1435 = vst.msk [vmem:[#allocation2 + $0x8] sm:$0xff] %vm851_vm2, %v1431_v29 }
 0x617   : > { %v2428_v32 = vld [vmem:[#allocation2 + $0x10] sm:$0xff] }
 0x618   : > { %v2430_v38 = vld [vmem:[#allocation2] sm:$0xff]  ;;  %v1454_v36 = vsel %vm851_vm2, %v2428_v32, 0.0  ;;  %v1466_v39 = vmul.f32 %v2428_v32, %v2428_v32 }
 0x619   : > { %v2432_v43 = vld [vmem:[#allocation2 + $0x18] sm:$0xff]  ;;  %v1448_v30 = vsel %vm851_vm2, %v2430_v38, 0.0  ;;  %1455 = vadd.xlane.f32.xlu1 %v1454_v36  ;;  %v1464_v35 = vmul.f32 %v2430_v38, %v2430_v38 }
 0x61a   : > { %v2438_v18 = vld [vmem:[#allocation2 + $0x8] sm:$0xff]  ;;  %1449 = vadd.xlane.f32.xlu0 %v1448_v30  ;;  %v1457_v31 = vsel %vm851_vm2, %v2432_v43, 0.0  ;;  %v1467_v37 = vmul.f32 %v2432_v43, %v2432_v43  ;;  %v1474_v41 = vsel %vm851_vm2, %v1466_v39, 0.0 }
 0x61b   : > { %v1451_v19 = vsel %vm851_vm2, %v2438_v18, 0.0  ;;  %v1465_v33 = vmul.f32 %v2438_v18, %v2438_v18  ;;  %v1468_v27 = vsel %vm851_vm2, %v1464_v35, 0.0 }
 0x61c   : > { %v1477_v40 = vsel %vm851_vm2, %v1467_v37, 0.0 }
 0x61d   : > { %1458 = vadd.xlane.f32.xlu1 %v1457_v31  ;;  %v1471_v26 = vsel %vm851_vm2, %v1465_v33, 0.0 }
 0x61e   : > { %1452 = vadd.xlane.f32.xlu0 %v1451_v19 }
 0x621   : > { %1472 = vadd.xlane.f32.xlu1 %v1471_v26 }
 0x622   : > { %1469 = vadd.xlane.f32.xlu0 %v1468_v27 }
 0x625   : > { %1478 = vadd.xlane.f32.xlu1 %v1477_v40 }
 0x626   : > { %1475 = vadd.xlane.f32.xlu0 %v1474_v41 }
 0x6a6   : > { %v1456_v46 = vpop.xlane.xlu1 %1455 }
 0x6a7   : > { %v1450_v47 = vpop.xlane.xlu0 %1449  ;;  %v1462_v51 = vmul.f32 0.03125, %v1456_v46 }
 0x6a8   : > { %v1460_v49 = vmul.f32 0.03125, %v1450_v47 }
 0x6a9   : > { %v1486_v60 = vmul.f32 %v1462_v51, %v1462_v51  ;;  %v1498_v28 = vsub.f32 %v2428_v32, %v1462_v51 }
 0x6aa   : > { %v1459_v48 = vpop.xlane.xlu1 %1458  ;;  %v1484_v54 = vmul.f32 %v1460_v49, %v1460_v49  ;;  %v1496_v15 = vsub.f32 %v2430_v38, %v1460_v49 }
 0x6ab   : > { %v1453_v11 = vpop.xlane.xlu0 %1452  ;;  %v1463_v16 = vmul.f32 0.03125, %v1459_v48 }
 0x6ac   : > { %v1461_v50 = vmul.f32 0.03125, %v1453_v11 }
 0x6ad   : > { %v1487_v61 = vmul.f32 %v1463_v16, %v1463_v16  ;;  %v1499_v24 = vsub.f32 %v2432_v43, %v1463_v16 }
 0x6ae   : > { %v1473_v52 = vpop.xlane.xlu1 %1472  ;;  %v1485_v55 = vmul.f32 %v1461_v50, %v1461_v50  ;;  %v1497_v13 = vsub.f32 %v2438_v18, %v1461_v50 }
 0x6af   : > { %v1470_v53 = vpop.xlane.xlu0 %1469  ;;  %v1481_v56 = vmul.f32 0.03125, %v1473_v52 }
 0x6b0   : > { %v1480_v57 = vmul.f32 0.03125, %v1470_v53 }
 0x6b1   : > { %v1489_v58 = vsub.f32 %v1481_v56, %v1485_v55 }
 0x6b2   : > { %v1488_v59 = vsub.f32 %v1480_v57, %v1484_v54  ;;  %v1479_v62 = vpop.xlane.xlu1 %1478 }
 0x6b3   : > { %v1476_v63 = vpop.xlane.xlu0 %1475  ;;  %v1493_v0 = vmax.f32 %v1489_v58, 0.0  ;;  %v1483_v2 = vmul.f32 0.03125, %v1479_v62 }
 0x6b4   : > { %v1492_v1 = vmax.f32 %v1488_v59, 0.0  ;;  %v1482_v3 = vmul.f32 0.03125, %v1476_v63 }
 0x6b5   : > { %v1501_v4 = vadd.f32 1e-05, %v1493_v0  ;;  %v1491_v6 = vsub.f32 %v1483_v2, %v1487_v61 }
 0x6b6   : > { %v1500_v5 = vadd.f32 1e-05, %v1492_v1  ;;  %v1490_v7 = vsub.f32 %v1482_v3, %v1486_v60  ;;  %v1844_v60 = vld [vmem:[%s2561_s1] ss:$0 sm:$0xff] }
 0x6b7   : > { %2021 = vrsqrt.f32 %v1501_v4  ;;  %v1495_v8 = vmax.f32 %v1491_v6, 0.0 }
 0x6b8   : > { %v1494_v9 = vmax.f32 %v1490_v7, 0.0  ;;  %2023 = vrsqrt.f32 %v1500_v5 }
 0x6b9   : > { %v1503_v10 = vadd.f32 1e-05, %v1495_v8 }
 0x6ba   : > { %v1502_v12 = vadd.f32 1e-05, %v1494_v9 }
 0x6bb   : > { %2025 = vrsqrt.f32 %v1503_v10 }
 0x6bc   : > { %2027 = vrsqrt.f32 %v1502_v12 }
 0x6c1   : > { %v2022_v14 = vpop.eup %2021 }
 0x6c2   : > { %v2024_v20 = vpop.eup %2023  ;;  %v1509_v21 = vmul.f32 %v2022_v14, %v1497_v13 }
 0x6c3   : > { %v1508_v22 = vmul.f32 %v2024_v20, %v1496_v15 }
 0x6c4   : > { %v1519_v34 = vmul.f32 %v1842_v17, %v1509_v21 }
 0x6c5   : > { %v2026_v25 = vpop.eup %2025  ;;  %v1518_v29 = vmul.f32 %v1842_v17, %v1508_v22 }
 0x6c6   : > { %v2028_v36 = vpop.eup %2027  ;;  %v1511_v38 = vmul.f32 %v2026_v25, %v1499_v24  ;;  %v1529_v30 = vadd.f32 %v1843_v23, %v1519_v34 }
 0x6c7   : > { %v1510_v18 = vmul.f32 %v2028_v36, %v1498_v28  ;;  %v1528_v31 = vadd.f32 %v1843_v23, %v1518_v29 }
 0x6c8   : > { %v1521_v19 = vmul.f32 %v1842_v17, %v1511_v38  ;;  %v1533_v33 = vsel %vm851_vm2, %v1529_v30, 0.0 }
 0x6c9   : > { %v1520_v35 = vmul.f32 %v1842_v17, %v1510_v18  ;;  %v1532_v26 = vsel %vm851_vm2, %v1528_v31, 0.0 }
 0x6ca   : > { %v1531_v27 = vadd.f32 %v1843_v23, %v1521_v19  ;;  %v1534_v37 = vadd.f32 %v1533_v33, %v1532_v26 }
 0x6cb   : > { %v1530_v39 = vadd.f32 %v1843_v23, %v1520_v35 }
 0x6cc   : > { %v1535_v43 = vrot.slane %v1534_v37, 4  ;;  %v1542_v40 = vsel %vm851_vm2, %v1531_v27, 0.0 }
 0x6cd   : > { %v1541_v32 = vsel %vm851_vm2, %v1530_v39, 0.0 }
 0x6ce   : > { %v1536_v41 = vadd.f32 %v1535_v43, %v1534_v37  ;;  %v1543_v42 = vadd.f32 %v1542_v40, %v1541_v32 }
 0x6d0   : > { %v1537_v44 = vrot.slane %v1536_v41, 2  ;;  %v1544_v45 = vrot.slane %v1543_v42, 4 }
 0x6d2   : > { %v1538_v46 = vadd.f32 %v1537_v44, %v1536_v41  ;;  %v1545_v47 = vadd.f32 %v1544_v45, %v1543_v42 }
 0x6d4   : > { %v1539_v48 = vrot.slane %v1538_v46, 1  ;;  %v1546_v11 = vrot.slane %v1545_v47, 2 }
 0x6d6   : > { %v1540_v49 = vadd.f32 %v1539_v48, %v1538_v46  ;;  %v1547_v50 = vadd.f32 %v1546_v11, %v1545_v47 }
 0x6d8   : > { %v1548_v51 = vrot.slane %v1547_v50, 1  ;;  %v1551_v16 = vmul.f32 0.0625, %v1540_v49 }
 0x6da   : > { %v1549_v52 = vadd.f32 %v1548_v51, %v1547_v50  ;;  %v1557_v54 = vpack.c.bf16 %v1551_v16, %v1551_v16 }
 0x6dc   : > { %v1552_v53 = vmul.f32 0.0625, %v1549_v52  ;;  %v1568_v56 = vunpack.c.l.b16 %v1557_v54 }
 0x6de   : > { %v1558_v55 = vpack.c.bf16 %v1552_v53, %v1552_v53 }
 0x6e0   : > { %v1569_v57 = vunpack.c.l.b16 %v1558_v55 }
 0x6e2   : > { %v1571_v58 = vsel %vm1570_vm6, %v1569_v57, %v1568_v56 }
 0x6e3   : > { %v1572_v59 = vpack.c.b16 %v1571_v58, %v1571_v58 }
 0x6e5   : > { %1937 = vmatmul.mubr.msk.bf16.vlgmr.msra.gmra.mrb[0].mxu0 %vm851_vm2, %v1572_v59 }
 0x7b8   : > { %v1622_v61 = vpop.f32.mrb[0].mxu0 }
 0x7b9   : > { %v1623_v62 = vadd.f32 %v1844_v60, %v1622_v61  ;;  %v1938_v63 = vpop.f32.mrb[1].mxu0 }
 0x7ba   : > { %v1625_v0 = vpop.f32.mrb[2].mxu0 }
 0x7bb   : > { %1628 = vst [vmem:[#allocation3] sm:$0x3] %v1623_v62  ;;  %v1939_v1 = vpop.f32.mrb[3].mxu0 }
 0x7bc PF: > { %s2562_s23 = sld [smem:[#allocation7_spill]]  ;;  %s2088_s30 = smov [#allocation3]  }
 0x7bd   : > { %s1638_s28 = sshll.u32 %s2088_s30, 4  ;;  %s1639_s28 = int_to_ptr.vmem [resolvable:$true] %s1638_s28 }
 0x7be   : > { %s2029_s18 = scalar_lea.vmem %s1639_s28, 32  ;;  %p2036_p11 = scmp.lt.s32.totalorder %s1639_s28, %s1639_s28 }
 0x7bf   : > { %p2030_p8 = scmp.ne.s32.totalorder %s1639_s28, %s2029_s18  ;;  %p2037_p12 = scmp.lt.s32.totalorder %s2029_s18, %s2029_s18 }
 0x7c1   : > { %p2038_p13 = por %p2037_p12, %p2036_p11 }
 0x7c2   : > { %s2563_s25 = sadd.s32 4294967295, %s2562_s23  }
 0x7c3   : > { %p2482_p7 = scmp.eq.s32.totalorder %s2563_s25, 1 }
 0x7c5   : > { %p2031_p9 = pnand %p2030_p8, %p2482_p7 }
 0x7c7   : > { %p2032_p10 = pneg %p2031_p9 }
 0x7c9   : > { %p2039_p0 = pnand %p2038_p13, %p2032_p10 }
 0x7cb   : > { %2042 = shalt.err (!%p2039_p0)
}
 0x7cc   : > { %s2565_s24 = sld [smem:[#allocation17_spill]] }
 0x7d2   : > { %s2566_s29 = smov %s2565_s24  ;;  %s2043_s26 = scalar_lea.hbm %s2565_s24, 32 }
 0x7d3   : > { %p2044_p1 = scmp.ne.s32.totalorder %s2566_s29, %s2043_s26  ;;  %p2049_p4 = scmp.lt.u32.totalorder %s2043_s26, %s2566_s29 }
 0x7d5   : > { %p2045_p2 = pnand %p2044_p1, %p2482_p7 }
 0x7d7   : > { %p2046_p3 = pneg %p2045_p2 }
 0x7d9   : > { %p2051_p5 = pnand %p2049_p4, %p2046_p3 }
 0x7db   : > { %2054 = shalt.err (!%p2051_p5)
}
 0x7dc   : > { %1941 = dma.vmem_to_hbm [thread:$0]  (%p2482_p7), %s1639_s28, 32, %s2566_s29, [#allocation4]  }
 0x7dd   : > { %2068 = dma.done.wait (%p2482_p7), [#allocation4], 32  }
 0x7de   : > { %2070 = vsyncadd (%p2482_p7), [#allocation4], 4294967264 }
 0x7df PF: > { %s2567_s6 = sld [smem:[#allocation7_spill]]  ;;  %s2568_s24 = sld [smem:[#allocation6_spill]] }
 0x7e0   : > { %s2569_s25 = sld [smem:[#allocation8_spill]] }
 0x7e5   : > { %s28_s26 = sadd.s32 1, %s2567_s6  }
 0x7e6   : > { %p25_p6 = scmp.ge.s32.totalorder %s28_s26, 4  }
 0x7e8   :  { %27 = sbr.rel (!%p25_p6) target bundleno = 12 (0xc), region = 154 }
 0x7ef   :  { %1651 = vsyncpa [#allocation4], 1 }
 0x7f0   :  { %1653 = vsyncpa [#allocation4 + $0x1], 1 }

</bundles_post_ra>
